<compile_context>
chip_gen: v7x
topology: tpu7x:2x2x1
jax: 0.10.0
libtpu: 0.0.40
codegen_flags: <defaults>
</compile_context>

<pallas_src>
import functools

import jax
import jax.numpy as jnp
from jax.experimental import pallas as pl
from jax.experimental.pallas import tpu as pltpu


# ----------------------------- Pallas kernels ------------------------------ #

def _conv_mm_kernel(w_ref, x_ref, scale_ref, bias_ref, o_ref):
    # (OC, K) @ (K, TILE_M) on the MXU (bf16 in, f32 acc), fused per-channel
    # BN scale/bias + ReLU on the VPU, lane-dense store of (OC, TILE_M).
    acc = jnp.dot(w_ref[...], x_ref[...], preferred_element_type=jnp.float32)
    acc = acc * scale_ref[...] + bias_ref[...]
    o_ref[...] = jnp.maximum(acc, 0.0).astype(o_ref.dtype)


def _head_two_kernel(x_ref, w1_ref, b1_ref, w2_ref, b2_ref, o_ref):
    # Fused: o = (relu(x @ w1 + b1)) @ w2 + b2 ; intermediate stays in vregs.
    h = jnp.dot(x_ref[...], w1_ref[...], preferred_element_type=jnp.float32)
    h = jnp.maximum(h + b1_ref[...], 0.0)
    o = jnp.dot(h.astype(w2_ref.dtype), w2_ref[...],
                preferred_element_type=jnp.float32)
    o_ref[...] = (o + b2_ref[...]).astype(o_ref.dtype)


def _linear_kernel(x_ref, w_ref, b_ref, o_ref):
    o = jnp.dot(x_ref[...], w_ref[...], preferred_element_type=jnp.float32)
    o_ref[...] = (o + b_ref[...]).astype(o_ref.dtype)


# ------------------------------ kernel wrappers ----------------------------- #

_VMEM_LIMIT = 64 * 1024 * 1024


def _round_up(x, m):
    return (x + m - 1) // m * m


def conv_matmul_t(w_t, patches_t, scale, bias, *, tile_m=512):
    """out^T = relu(scale * (w_t @ patches_t) + bias); shapes (OC,K)@(K,M)."""
    OC, K = w_t.shape
    K2, M = patches_t.shape
    assert K == K2
    if M > tile_m:
        Mp, tile = _round_up(M, tile_m), tile_m
    else:
        Mp, tile = _round_up(M, 128), _round_up(M, 128)
    if Mp != M:
        patches_t = jnp.pad(patches_t, ((0, 0), (0, Mp - M)))

    out = pl.pallas_call(
        _conv_mm_kernel,
        out_shape=jax.ShapeDtypeStruct((OC, Mp), jnp.bfloat16),
        grid=(Mp // tile,),
        in_specs=[
            pl.BlockSpec((OC, K), lambda i: (0, 0)),      # weights, resident
            pl.BlockSpec((K, tile), lambda i: (0, i)),    # patch tile (pipelined)
            pl.BlockSpec((OC, 1), lambda i: (0, 0)),      # folded BN scale
            pl.BlockSpec((OC, 1), lambda i: (0, 0)),      # folded BN bias
        ],
        out_specs=pl.BlockSpec((OC, tile), lambda i: (0, i)),
        compiler_params=pltpu.CompilerParams(
            dimension_semantics=("parallel",),            # megacore on v7x
            vmem_limit_bytes=_VMEM_LIMIT),
    )(w_t, patches_t, scale, bias)
    return out[:, :M] if Mp != M else out


def fused_head(flat, w1, b1, w2, b2):
    B = flat.shape[0]
    N = w2.shape[1]
    return pl.pallas_call(
        _head_two_kernel,
        out_shape=jax.ShapeDtypeStruct((B, N), jnp.float32),
        in_specs=[pl.BlockSpec(memory_space=pltpu.MemorySpace.VMEM)] * 5,
        out_specs=pl.BlockSpec(memory_space=pltpu.MemorySpace.VMEM),
        compiler_params=pltpu.CompilerParams(vmem_limit_bytes=_VMEM_LIMIT),
    )(flat, w1, b1, w2, b2)


def single_head(flat, w, b):
    B = flat.shape[0]
    N = w.shape[1]
    return pl.pallas_call(
        _linear_kernel,
        out_shape=jax.ShapeDtypeStruct((B, N), jnp.float32),
        in_specs=[pl.BlockSpec(memory_space=pltpu.MemorySpace.VMEM)] * 3,
        out_specs=pl.BlockSpec(memory_space=pltpu.MemorySpace.VMEM),
        compiler_params=pltpu.CompilerParams(vmem_limit_bytes=_VMEM_LIMIT),
    )(flat, w, b)


# ------------------------------- conv glue ---------------------------------- #

def im2col_t(x_cbhw, k, stride):
    """Channel-leading input (C,B,H,W) -> transposed patches (k*k*C, B*OH*OW)."""
    C, B, H, W = x_cbhw.shape
    OH = (H - k) // stride + 1
    OW = (W - k) // stride + 1
    taps = []
    for i in range(k):
        for j in range(k):
            taps.append(
                x_cbhw[:, :, i:i + stride * OH:stride, j:j + stride * OW:stride])
    p = jnp.stack(taps, axis=0)                 # (k*k, C, B, OH, OW)
    return p.reshape(k * k * C, B * OH * OW), (B, OH, OW)


# ------------------------------- parameters --------------------------------- #

def conv2d_size_out(size, kernel_size=5, stride=2):
    return (size - (kernel_size - 1) - 1) // stride + 1


def init_params(key, c, h, w, outputs):
    """Raw parameters in PyTorch layout (deterministic, torch-style init)."""
    keys = iter(jax.random.split(key, 32))

    def uniform(shape, bound):
        return jax.random.uniform(next(keys), shape, jnp.float32, -bound, bound)

    def conv_init(oc, ic, k):
        fan_in = ic * k * k
        b = 1.0 / jnp.sqrt(fan_in)
        return uniform((oc, ic, k, k), b), uniform((oc,), b)

    def bn_init(ch):
        gamma = 1.0 + 0.1 * jax.random.normal(next(keys), (ch,), jnp.float32)
        beta = 0.1 * jax.random.normal(next(keys), (ch,), jnp.float32)
        rmean = 0.1 * jax.random.normal(next(keys), (ch,), jnp.float32)
        rvar = 1.0 + 0.1 * jax.random.uniform(next(keys), (ch,), jnp.float32)
        return gamma, beta, rmean, rvar

    def linear_init(out_f, in_f):
        b = 1.0 / jnp.sqrt(in_f)
        return uniform((out_f, in_f), b), uniform((out_f,), b)

    convw = conv2d_size_out(conv2d_size_out(conv2d_size_out(w)))
    convh = conv2d_size_out(conv2d_size_out(conv2d_size_out(h)))
    linear_input_size = convw * convh * 32
    two_head = convw * convh > 3 * outputs

    raw = {
        "conv1": conv_init(16, c, 5), "bn1": bn_init(16),
        "conv2": conv_init(32, 16, 5), "bn2": bn_init(32),
        "conv3": conv_init(32, 32, 5), "bn3": bn_init(32),
    }
    if two_head:
        raw["head_"] = linear_init(convw * convh, linear_input_size)
        raw["head"] = linear_init(outputs, convw * convh)
    else:
        raw["head"] = linear_init(outputs, linear_input_size)
    cfg = {"convw": convw, "convh": convh, "outputs": outputs,
           "two_head": two_head}
    return raw, cfg


def prepare_params(raw, eps=1e-5):
    """One-time prep: fold BN (eval mode), transpose weights, cast MXU inputs
    to bf16. Done outside the hot path so no runtime .T / scale math remains."""
    p = {}
    for idx in (1, 2, 3):
        w, b = raw[f"conv{idx}"]
        gamma, beta, rmean, rvar = raw[f"bn{idx}"]
        OC = w.shape[0]
        # (OC, IC, KH, KW) -> (OC, KH*KW*IC), matching im2col_t K-ordering.
        w_t = jnp.transpose(w, (0, 2, 3, 1)).reshape(OC, -1).astype(jnp.bfloat16)
        scale = (gamma / jnp.sqrt(rvar + eps)).astype(jnp.float32)
        bias = (scale * (b - rmean) + beta).astype(jnp.float32)
        p[f"conv{idx}"] = (w_t, scale.reshape(OC, 1), bias.reshape(OC, 1))
    if "head_" in raw:
        w1, b1 = raw["head_"]
        p["head_"] = (jnp.transpose(w1).astype(jnp.bfloat16),
                      b1.reshape(1, -1).astype(jnp.float32))
    w2, b2 = raw["head"]
    p["head"] = (jnp.transpose(w2).astype(jnp.bfloat16),
                 b2.reshape(1, -1).astype(jnp.float32))
    return p


# -------------------------------- forward ----------------------------------- #

@functools.partial(jax.jit, static_argnames=("two_head",))
def net_forward(params, x_nchw, *, two_head):
    # NCHW (PyTorch) -> channel-leading (C, B, H, W); bf16 activations.
    x = jnp.transpose(x_nchw, (1, 0, 2, 3)).astype(jnp.bfloat16)

    for idx in (1, 2, 3):
        w_t, scale, bias = params[f"conv{idx}"]
        patches_t, (B, OH, OW) = im2col_t(x, 5, 2)
        out_t = conv_matmul_t(w_t, patches_t, scale, bias)   # (OC, B*OH*OW)
        x = out_t.reshape(w_t.shape[0], B, OH, OW)            # stay channel-leading

    # Flatten exactly like torch's x.view(B, -1) on an NCHW tensor.
    B = x.shape[1]
    flat = jnp.transpose(x, (1, 0, 2, 3)).reshape(B, -1)      # (B, 32*convh*convw)

    if two_head:
        w1, b1 = params["head_"]
        w2, b2 = params["head"]
        return fused_head(flat, w1, b1, w2, b2)
    else:
        w2, b2 = params["head"]
        return single_head(flat, w2, b2)


# ---------------------------------- main ------------------------------------ #

if __name__ == "__main__":
    B, C, H, W = 2, 4, 64, 64
    OUTPUTS = 4   # convw*convh = 25 > 3*4 -> two-layer head branch is exercised

    key = jax.random.PRNGKey(0)
    k_param, k_x = jax.random.split(key)
    raw_params, cfg = init_params(k_param, C, H, W, OUTPUTS)
    params = prepare_params(raw_params)
    x = jax.random.normal(k_x, (B, C, H, W), jnp.float32)

    out = net_forward(params, x, two_head=cfg["two_head"])
    out = jax.block_until_ready(out)
    assert out.shape == (B, OUTPUTS), out.shape
    print("KERNEL_OK")
</pallas_src>

<mosaic_0001>
module attributes {stable_mosaic.version = 11 : i64} {
  func.func @_conv_mm_kernel(%arg0: i32, %arg1: memref<16x100xbf16, #tpu.memory_space<vmem>>, %arg2: memref<100x512xbf16, #tpu.memory_space<vmem>>, %arg3: memref<16x1xf32, #tpu.memory_space<vmem>>, %arg4: memref<16x1xf32, #tpu.memory_space<vmem>>, %arg5: memref<16x512xbf16, #tpu.memory_space<vmem>>) attributes {dimension_semantics = [#tpu.dimension_semantics<parallel>], iteration_bounds = array<i64: 4>, scalar_prefetch = 0 : i64, scratch_operands = 0 : i64, tpu.core_type = #tpu.core_type<tc>, window_params = [{pipeline_mode = #tpu.pipeline_mode<synchronous>, transform_indices = @transform_0, window_bounds = array<i64: 16, 100>}, {transform_indices = @transform_1, window_bounds = array<i64: 100, 512>}, {pipeline_mode = #tpu.pipeline_mode<synchronous>, transform_indices = @transform_2, window_bounds = array<i64: 16, 1>}, {pipeline_mode = #tpu.pipeline_mode<synchronous>, transform_indices = @transform_3, window_bounds = array<i64: 16, 1>}, {transform_indices = @transform_4, window_bounds = array<i64: 16, 512>}]} {
    %c0 = arith.constant 0 : index
    %c0_0 = arith.constant 0 : index
    %0 = vector.load %arg1[%c0, %c0_0] : memref<16x100xbf16, #tpu.memory_space<vmem>>, vector<16x100xbf16>
    %c0_1 = arith.constant 0 : index
    %c0_2 = arith.constant 0 : index
    %1 = vector.load %arg2[%c0_1, %c0_2] : memref<100x512xbf16, #tpu.memory_space<vmem>>, vector<100x512xbf16>
    %cst = arith.constant dense<0.000000e+00> : vector<16x512xf32>
    %2 = tpu.matmul %0, %1, %cst {dimension_numbers = #tpu.dot_dimension_numbers<[1], [0], [0], [1], [0, 0, 1, 1], [], []>} : vector<16x100xbf16>, vector<100x512xbf16>, vector<16x512xf32> -> vector<16x512xf32>
    %c0_3 = arith.constant 0 : index
    %c0_4 = arith.constant 0 : index
    %3 = vector.load %arg3[%c0_3, %c0_4] : memref<16x1xf32, #tpu.memory_space<vmem>>, vector<16x1xf32>
    %4 = vector.broadcast %3 : vector<16x1xf32> to vector<16x512xf32>
    %5 = arith.mulf %2, %4 : vector<16x512xf32>
    %c0_5 = arith.constant 0 : index
    %c0_6 = arith.constant 0 : index
    %6 = vector.load %arg4[%c0_5, %c0_6] : memref<16x1xf32, #tpu.memory_space<vmem>>, vector<16x1xf32>
    %7 = vector.broadcast %6 : vector<16x1xf32> to vector<16x512xf32>
    %8 = arith.addf %5, %7 : vector<16x512xf32>
    %cst_7 = arith.constant 0.000000e+00 : f32
    %9 = vector.broadcast %cst_7 : f32 to vector<16x512xf32>
    %10 = arith.maximumf %8, %9 : vector<16x512xf32>
    %11 = arith.truncf %10 : vector<16x512xf32> to vector<16x512xbf16>
    %c0_8 = arith.constant 0 : index
    %c0_9 = arith.constant 0 : index
    %12 = vector.load %arg5[%c0_8, %c0_9] : memref<16x512xbf16, #tpu.memory_space<vmem>>, vector<16x512xbf16>
    tpu.vector_store %arg5[%c0_8, %c0_9], %11 {strides = array<i32>} : memref<16x512xbf16, #tpu.memory_space<vmem>>, vector<16x512xbf16>,
    return
  }
  func.func @transform_0(%arg0: i32) -> (i32, i32) {
    %c0_i32 = arith.constant 0 : i32
    %c0_i32_0 = arith.constant 0 : i32
    %c0_i32_1 = arith.constant 0 : i32
    return %c0_i32, %c0_i32_0 : i32, i32
  }
  func.func @transform_1(%arg0: i32) -> (i32, i32) {
    %c0_i32 = arith.constant 0 : i32
    %c0_i32_0 = arith.constant 0 : i32
    return %c0_i32, %arg0 : i32, i32
  }
  func.func @transform_2(%arg0: i32) -> (i32, i32) {
    %c0_i32 = arith.constant 0 : i32
    %c0_i32_0 = arith.constant 0 : i32
    %c0_i32_1 = arith.constant 0 : i32
    return %c0_i32, %c0_i32_0 : i32, i32
  }
  func.func @transform_3(%arg0: i32) -> (i32, i32) {
    %c0_i32 = arith.constant 0 : i32
    %c0_i32_0 = arith.constant 0 : i32
    %c0_i32_1 = arith.constant 0 : i32
    return %c0_i32, %c0_i32_0 : i32, i32
  }
  func.func @transform_4(%arg0: i32) -> (i32, i32) {
    %c0_i32 = arith.constant 0 : i32
    %c0_i32_0 = arith.constant 0 : i32
    return %c0_i32, %arg0 : i32, i32
  }
}

module attributes {stable_mosaic.version = 11 : i64} {
  func.func @_conv_mm_kernel(%arg0: i32, %arg1: memref<32x400xbf16, #tpu.memory_space<vmem>>, %arg2: memref<400x384xbf16, #tpu.memory_space<vmem>>, %arg3: memref<32x1xf32, #tpu.memory_space<vmem>>, %arg4: memref<32x1xf32, #tpu.memory_space<vmem>>, %arg5: memref<32x384xbf16, #tpu.memory_space<vmem>>) attributes {dimension_semantics = [#tpu.dimension_semantics<parallel>], iteration_bounds = array<i64: 1>, scalar_prefetch = 0 : i64, scratch_operands = 0 : i64, tpu.core_type = #tpu.core_type<tc>, window_params = [{pipeline_mode = #tpu.pipeline_mode<synchronous>, transform_indices = @transform_0, window_bounds = array<i64: 32, 400>}, {transform_indices = @transform_1, window_bounds = array<i64: 400, 384>}, {pipeline_mode = #tpu.pipeline_mode<synchronous>, transform_indices = @transform_2, window_bounds = array<i64: 32, 1>}, {pipeline_mode = #tpu.pipeline_mode<synchronous>, transform_indices = @transform_3, window_bounds = array<i64: 32, 1>}, {transform_indices = @transform_4, window_bounds = array<i64: 32, 384>}]} {
    %c0 = arith.constant 0 : index
    %c0_0 = arith.constant 0 : index
    %0 = vector.load %arg1[%c0, %c0_0] : memref<32x400xbf16, #tpu.memory_space<vmem>>, vector<32x400xbf16>
    %c0_1 = arith.constant 0 : index
    %c0_2 = arith.constant 0 : index
    %1 = vector.load %arg2[%c0_1, %c0_2] : memref<400x384xbf16, #tpu.memory_space<vmem>>, vector<400x384xbf16>
    %cst = arith.constant dense<0.000000e+00> : vector<32x384xf32>
    %2 = tpu.matmul %0, %1, %cst {dimension_numbers = #tpu.dot_dimension_numbers<[1], [0], [0], [1], [0, 0, 1, 1], [], []>} : vector<32x400xbf16>, vector<400x384xbf16>, vector<32x384xf32> -> vector<32x384xf32>
    %c0_3 = arith.constant 0 : index
    %c0_4 = arith.constant 0 : index
    %3 = vector.load %arg3[%c0_3, %c0_4] : memref<32x1xf32, #tpu.memory_space<vmem>>, vector<32x1xf32>
    %4 = vector.broadcast %3 : vector<32x1xf32> to vector<32x384xf32>
    %5 = arith.mulf %2, %4 : vector<32x384xf32>
    %c0_5 = arith.constant 0 : index
    %c0_6 = arith.constant 0 : index
    %6 = vector.load %arg4[%c0_5, %c0_6] : memref<32x1xf32, #tpu.memory_space<vmem>>, vector<32x1xf32>
    %7 = vector.broadcast %6 : vector<32x1xf32> to vector<32x384xf32>
    %8 = arith.addf %5, %7 : vector<32x384xf32>
    %cst_7 = arith.constant 0.000000e+00 : f32
    %9 = vector.broadcast %cst_7 : f32 to vector<32x384xf32>
    %10 = arith.maximumf %8, %9 : vector<32x384xf32>
    %11 = arith.truncf %10 : vector<32x384xf32> to vector<32x384xbf16>
    %c0_8 = arith.constant 0 : index
    %c0_9 = arith.constant 0 : index
    %12 = vector.load %arg5[%c0_8, %c0_9] : memref<32x384xbf16, #tpu.memory_space<vmem>>, vector<32x384xbf16>
    tpu.vector_store %arg5[%c0_8, %c0_9], %11 {strides = array<i32>} : memref<32x384xbf16, #tpu.memory_space<vmem>>, vector<32x384xbf16>,
    return
  }
  func.func @transform_0(%arg0: i32) -> (i32, i32) {
    %c0_i32 = arith.constant 0 : i32
    %c0_i32_0 = arith.constant 0 : i32
    %c0_i32_1 = arith.constant 0 : i32
    return %c0_i32, %c0_i32_0 : i32, i32
  }
  func.func @transform_1(%arg0: i32) -> (i32, i32) {
    %c0_i32 = arith.constant 0 : i32
    %c0_i32_0 = arith.constant 0 : i32
    return %c0_i32, %arg0 : i32, i32
  }
  func.func @transform_2(%arg0: i32) -> (i32, i32) {
    %c0_i32 = arith.constant 0 : i32
    %c0_i32_0 = arith.constant 0 : i32
    %c0_i32_1 = arith.constant 0 : i32
    return %c0_i32, %c0_i32_0 : i32, i32
  }
  func.func @transform_3(%arg0: i32) -> (i32, i32) {
    %c0_i32 = arith.constant 0 : i32
    %c0_i32_0 = arith.constant 0 : i32
    %c0_i32_1 = arith.constant 0 : i32
    return %c0_i32, %c0_i32_0 : i32, i32
  }
  func.func @transform_4(%arg0: i32) -> (i32, i32) {
    %c0_i32 = arith.constant 0 : i32
    %c0_i32_0 = arith.constant 0 : i32
    return %c0_i32, %arg0 : i32, i32
  }
}

module attributes {stable_mosaic.version = 11 : i64} {
  func.func @_conv_mm_kernel(%arg0: i32, %arg1: memref<32x800xbf16, #tpu.memory_space<vmem>>, %arg2: memref<800x128xbf16, #tpu.memory_space<vmem>>, %arg3: memref<32x1xf32, #tpu.memory_space<vmem>>, %arg4: memref<32x1xf32, #tpu.memory_space<vmem>>, %arg5: memref<32x128xbf16, #tpu.memory_space<vmem>>) attributes {dimension_semantics = [#tpu.dimension_semantics<parallel>], iteration_bounds = array<i64: 1>, scalar_prefetch = 0 : i64, scratch_operands = 0 : i64, tpu.core_type = #tpu.core_type<tc>, window_params = [{pipeline_mode = #tpu.pipeline_mode<synchronous>, transform_indices = @transform_0, window_bounds = array<i64: 32, 800>}, {transform_indices = @transform_1, window_bounds = array<i64: 800, 128>}, {pipeline_mode = #tpu.pipeline_mode<synchronous>, transform_indices = @transform_2, window_bounds = array<i64: 32, 1>}, {pipeline_mode = #tpu.pipeline_mode<synchronous>, transform_indices = @transform_3, window_bounds = array<i64: 32, 1>}, {transform_indices = @transform_4, window_bounds = array<i64: 32, 128>}]} {
    %c0 = arith.constant 0 : index
    %c0_0 = arith.constant 0 : index
    %0 = vector.load %arg1[%c0, %c0_0] : memref<32x800xbf16, #tpu.memory_space<vmem>>, vector<32x800xbf16>
    %c0_1 = arith.constant 0 : index
    %c0_2 = arith.constant 0 : index
    %1 = vector.load %arg2[%c0_1, %c0_2] : memref<800x128xbf16, #tpu.memory_space<vmem>>, vector<800x128xbf16>
    %cst = arith.constant dense<0.000000e+00> : vector<32x128xf32>
    %2 = tpu.matmul %0, %1, %cst {dimension_numbers = #tpu.dot_dimension_numbers<[1], [0], [0], [1], [0, 0, 1, 1], [], []>} : vector<32x800xbf16>, vector<800x128xbf16>, vector<32x128xf32> -> vector<32x128xf32>
    %c0_3 = arith.constant 0 : index
    %c0_4 = arith.constant 0 : index
    %3 = vector.load %arg3[%c0_3, %c0_4] : memref<32x1xf32, #tpu.memory_space<vmem>>, vector<32x1xf32>
    %4 = vector.broadcast %3 : vector<32x1xf32> to vector<32x128xf32>
    %5 = arith.mulf %2, %4 : vector<32x128xf32>
    %c0_5 = arith.constant 0 : index
    %c0_6 = arith.constant 0 : index
    %6 = vector.load %arg4[%c0_5, %c0_6] : memref<32x1xf32, #tpu.memory_space<vmem>>, vector<32x1xf32>
    %7 = vector.broadcast %6 : vector<32x1xf32> to vector<32x128xf32>
    %8 = arith.addf %5, %7 : vector<32x128xf32>
    %cst_7 = arith.constant 0.000000e+00 : f32
    %9 = vector.broadcast %cst_7 : f32 to vector<32x128xf32>
    %10 = arith.maximumf %8, %9 : vector<32x128xf32>
    %11 = arith.truncf %10 : vector<32x128xf32> to vector<32x128xbf16>
    %c0_8 = arith.constant 0 : index
    %c0_9 = arith.constant 0 : index
    %12 = vector.load %arg5[%c0_8, %c0_9] : memref<32x128xbf16, #tpu.memory_space<vmem>>, vector<32x128xbf16>
    tpu.vector_store %arg5[%c0_8, %c0_9], %11 {strides = array<i32>} : memref<32x128xbf16, #tpu.memory_space<vmem>>, vector<32x128xbf16>,
    return
  }
  func.func @transform_0(%arg0: i32) -> (i32, i32) {
    %c0_i32 = arith.constant 0 : i32
    %c0_i32_0 = arith.constant 0 : i32
    %c0_i32_1 = arith.constant 0 : i32
    return %c0_i32, %c0_i32_0 : i32, i32
  }
  func.func @transform_1(%arg0: i32) -> (i32, i32) {
    %c0_i32 = arith.constant 0 : i32
    %c0_i32_0 = arith.constant 0 : i32
    return %c0_i32, %arg0 : i32, i32
  }
  func.func @transform_2(%arg0: i32) -> (i32, i32) {
    %c0_i32 = arith.constant 0 : i32
    %c0_i32_0 = arith.constant 0 : i32
    %c0_i32_1 = arith.constant 0 : i32
    return %c0_i32, %c0_i32_0 : i32, i32
  }
  func.func @transform_3(%arg0: i32) -> (i32, i32) {
    %c0_i32 = arith.constant 0 : i32
    %c0_i32_0 = arith.constant 0 : i32
    %c0_i32_1 = arith.constant 0 : i32
    return %c0_i32, %c0_i32_0 : i32, i32
  }
  func.func @transform_4(%arg0: i32) -> (i32, i32) {
    %c0_i32 = arith.constant 0 : i32
    %c0_i32_0 = arith.constant 0 : i32
    return %c0_i32, %arg0 : i32, i32
  }
}

module attributes {stable_mosaic.version = 11 : i64} {
  func.func @_head_two_kernel(%arg0: memref<2x800xbf16, #tpu.memory_space<vmem>>, %arg1: memref<800x25xbf16, #tpu.memory_space<vmem>>, %arg2: memref<1x25xf32, #tpu.memory_space<vmem>>, %arg3: memref<25x4xbf16, #tpu.memory_space<vmem>>, %arg4: memref<1x4xf32, #tpu.memory_space<vmem>>, %arg5: memref<2x4xf32, #tpu.memory_space<vmem>>) attributes {dimension_semantics = [], scalar_prefetch = 0 : i64, scratch_operands = 0 : i64, tpu.core_type = #tpu.core_type<tc>} {
    %c0 = arith.constant 0 : index
    %c0_0 = arith.constant 0 : index
    %0 = vector.load %arg0[%c0, %c0_0] : memref<2x800xbf16, #tpu.memory_space<vmem>>, vector<2x800xbf16>
    %c0_1 = arith.constant 0 : index
    %c0_2 = arith.constant 0 : index
    %1 = vector.load %arg1[%c0_1, %c0_2] : memref<800x25xbf16, #tpu.memory_space<vmem>>, vector<800x25xbf16>
    %cst = arith.constant dense<0.000000e+00> : vector<2x25xf32>
    %2 = tpu.matmul %0, %1, %cst {dimension_numbers = #tpu.dot_dimension_numbers<[1], [0], [0], [1], [0, 0, 1, 1], [], []>} : vector<2x800xbf16>, vector<800x25xbf16>, vector<2x25xf32> -> vector<2x25xf32>
    %c0_3 = arith.constant 0 : index
    %c0_4 = arith.constant 0 : index
    %3 = vector.load %arg2[%c0_3, %c0_4] : memref<1x25xf32, #tpu.memory_space<vmem>>, vector<1x25xf32>
    %4 = vector.broadcast %3 : vector<1x25xf32> to vector<2x25xf32>
    %5 = arith.addf %2, %4 : vector<2x25xf32>
    %cst_5 = arith.constant 0.000000e+00 : f32
    %6 = vector.broadcast %cst_5 : f32 to vector<2x25xf32>
    %7 = arith.maximumf %5, %6 : vector<2x25xf32>
    %8 = arith.truncf %7 : vector<2x25xf32> to vector<2x25xbf16>
    %c0_6 = arith.constant 0 : index
    %c0_7 = arith.constant 0 : index
    %9 = vector.load %arg3[%c0_6, %c0_7] : memref<25x4xbf16, #tpu.memory_space<vmem>>, vector<25x4xbf16>
    %cst_8 = arith.constant dense<0.000000e+00> : vector<2x4xf32>
    %10 = tpu.matmul %8, %9, %cst_8 {dimension_numbers = #tpu.dot_dimension_numbers<[1], [0], [0], [1], [0, 0, 1, 1], [], []>} : vector<2x25xbf16>, vector<25x4xbf16>, vector<2x4xf32> -> vector<2x4xf32>
    %c0_9 = arith.constant 0 : index
    %c0_10 = arith.constant 0 : index
    %11 = vector.load %arg4[%c0_9, %c0_10] : memref<1x4xf32, #tpu.memory_space<vmem>>, vector<1x4xf32>
    %12 = vector.broadcast %11 : vector<1x4xf32> to vector<2x4xf32>
    %13 = arith.addf %10, %12 : vector<2x4xf32>
    %c0_11 = arith.constant 0 : index
    %c0_12 = arith.constant 0 : index
    %14 = vector.load %arg5[%c0_11, %c0_12] : memref<2x4xf32, #tpu.memory_space<vmem>>, vector<2x4xf32>
    tpu.vector_store %arg5[%c0_11, %c0_12], %13 {strides = array<i32>} : memref<2x4xf32, #tpu.memory_space<vmem>>, vector<2x4xf32>,
    return
  }
}

</mosaic_0001>

<bundles_post_ra>
// kernel: net_forward.4
= control target key start
LH: loop header
LB: loop body
LE: loop exit
PB: predicated region body
PF: predicated region fallthrough
CT: control target
= control target key end

     0   :  { %s1438_s0 = inlined_call_operand.hbm [shape: bf16[16,100], index: 0, kind: input, shape index: {}]   ;;  %s1439_s1 = inlined_call_operand.hbm [shape: bf16[100,2048], index: 1, kind: input, shape index: {}]   ;;  %s1440_s2 = inlined_call_operand.hbm [shape: f32[16,1], index: 2, kind: input, shape index: {}]   ;;  %s1441_s3 = inlined_call_operand.hbm [shape: f32[16,1], index: 3, kind: input, shape index: {}]   ;;  %s1442_s4 = inlined_call_operand.hbm [shape: bf16[16,2048], index: 4, kind: output, shape index: {}]  }
   0x1   :  { %1452 = sst [smem:[#allocation18_spill]] %s1440_s2 }
   0x2   :  { %9 = vsyncpa [#allocation3], 0 }
   0x3   :  { %10 = vsyncpa [#allocation6], 0 }
   0x4   :  { %12 = vsyncpa [#allocation6 + $0x1], 0 }
   0x5   :  { %13 = vsyncpa [#allocation9], 0 }
   0x6   :  { %14 = vsyncpa [#allocation4], 0 }
   0x7   :  { %16 = vsyncpa [#allocation4 + $0x1], 0  ;;  %s1152_s15 = smov 0   ;;  %s1154_s16 = smov 0  }
   0x8   :  { %s1156_s17 = smov 0   ;;  %s1158_s18 = smov 0  }
   0x9 LB: > { %s1173_s19 = sadd.s32 4294967295, %s1109_s18   ;;  %s723_s20 = sadd.s32 4294967294, %s1109_s18   ;;  %s1109_s18 = sphi %s1158_s18, %s1479_s18   ;;  %s1105_s17 = sphi %s1156_s17, %s1483_s17   ;;  %s1101_s16 = sphi %s1154_s16, %s1482_s16   ;;  %s1097_s15 = sphi %s1152_s15, %s1481_s15  }
   0xa   : > { %s1177_s21 = sadd.s32 1, %s1109_s18   ;;  %s50_s22 = sadd.s32 1, %s1105_s17 }
   0xb   : > { %1453 = sst [smem:[#allocation16_spill]] %s1177_s21  ;;  %s47_s23 = ssub.s32 %s1109_s18, %s1177_s21 }
   0xc   : > { %p57_p0 = scmp.ne.s32.totalorder %s1105_s17, %s1101_s16  ;;  %p48_p1 = scmp.eq.s32.totalorder %s47_s23, 0 }
   0xd   : > { %p58_p2 = scmp.eq.s32.totalorder %s1109_s18, 0  ;;  %p63_p3 = scmp.ne.s32.totalorder %s1101_s16, %s1097_s15 }
   0xe   : > { %p1443_p4 = scmp.eq.s32.totalorder %s1173_s19, 0  ;;  %p129_p7 = scmp.eq.s32.totalorder %s1173_s19, 3 }
   0xf   : > { %s1189_s24 = scalar_select %p48_p1, %s1105_s17, %s50_s22  }
  0x10   : > { %p1191_p5 = por %p58_p2, %p57_p0  ;;  %p1197_p6 = por %p1443_p4, %p63_p3 }
  0x11   : > { %1454 = sst [smem:[#allocation17_spill]] %s1189_s24  ;;  %p135_p8 = scmp.eq.s32.totalorder %s723_s20, 3 }
  0x12   : > { %s1455_s25 = scalar_select %p1191_p5, 1, 0 }
  0x13   : > { %s1456_s26 = scalar_select %p1197_p6, 1, 0 }
  0x14   : > { %p724_p9 = scmp.ge.s32.totalorder %s1109_s18, 1  ;;  %p142_p10 = scmp.lt.s32.totalorder %s1109_s18, 5 }
  0x15   : > { %p1204_p11 = por %p129_p7, %p57_p0  ;;  %p1208_p12 = por %p135_p8, %p63_p3 }
  0x16   : > { %p1212_p13 = pnand %p724_p9, %p142_p10  ;;  %s1111_s30 = smov [#allocation7]  }
  0x17   : > { %s1457_s27 = scalar_select %p1204_p11, 1, 0 }
  0x18   : > { %s1458_s28 = scalar_select %p1208_p12, 1, 0 }
  0x19   : > { %s1459_s29 = scalar_select %p1212_p13, 1, 0 }
  0x1a   : > { %p802_p1 = pneg %p1212_p13  ;;  %s167_s5 = sshll.u32 %s1111_s30, 4  ;;  %s168_s5 = int_to_ptr.vmem [resolvable:$true] %s167_s5 }
  0x1b   : > { %s1112_s7 = smov [#allocation2]   ;;  %s1461_s2 = sld [smem:[#allocation18_spill]] }
  0x1c   : > { %p1220_p2 = pnand %p802_p1, %p1443_p4  ;;  %s154_s8 = sshll.u32 %s1112_s7, 4  ;;  %s155_s8 = int_to_ptr.vmem [resolvable:$true] %s154_s8 }
  0x1e   : > { %p1233_p7 = pneg %p1220_p2 }
  0x21   : > { %s917_s11 = scalar_lea.hbm %s1461_s2, 256 }
  0x22   : > { %p918_p3 = scmp.ne.s32.totalorder %s1461_s2, %s917_s11  ;;  %p924_p10 = scmp.lt.u32.totalorder %s917_s11, %s1461_s2 }
  0x24   : > { %p920_p8 = pnand %p1233_p7, %p918_p3 }
  0x26   : > { %p921_p9 = pneg %p920_p8 }
  0x28   : > { %p926_p1 = pnand %p924_p10, %p921_p9 }
  0x2a   : > { %929 = shalt.err (!%p926_p1)
}
  0x2b   : > { %s930_s23 = scalar_lea.vmem %s168_s5, 256  ;;  %p938_p11 = scmp.lt.s32.totalorder %s168_s5, %s168_s5 }
  0x2c   : > { %p931_p4 = scmp.ne.s32.totalorder %s168_s5, %s930_s23  ;;  %p939_p6 = scmp.lt.s32.totalorder %s930_s23, %s930_s23 }
  0x2e   : > { %p933_p0 = pnand %p931_p4, %p1233_p7  ;;  %p940_p13 = por %p939_p6, %p938_p11 }
  0x30   : > { %p934_p12 = pneg %p933_p0 }
  0x32   : > { %p941_p5 = pnand %p940_p13, %p934_p12 }
  0x34   : > { %944 = shalt.err (!%p941_p5)
}
  0x35   : > { %s1448_s30 = smov 128   ;;  %s1449_s7 = smov 8  }
  0x36   : > { %808 = dma.hbm_to_vmem [thread:$0]  (!%p1220_p2), %s1461_s2, 256, %s168_s5, [#allocation6], %s1448_s30, %s1448_s30, %s1449_s7  }
  0x37   : > { %p1463_p4 = scmp.ne.s32.totalorder %s1455_s25, 0  ;;  %p1464_p0 = scmp.lt.s32.totalorder %s1109_s18, 4 }
  0x38   : > { %s945_s20 = scalar_lea.hbm %s1438_s0, 128 }
  0x39   : > { %p1256_p3 = pnand %p1464_p0, %p1463_p4  ;;  %p946_p5 = scmp.ne.s32.totalorder %s1438_s0, %s945_s20 }
  0x3a   : > { %p952_p12 = scmp.lt.u32.totalorder %s945_s20, %s1438_s0 }
  0x3b   : > { %s1465_s11 = scalar_select %p1256_p3, 1, 0 }
  0x3c   : > { %p948_p6 = pnand %p946_p5, %p1233_p7 }
  0x3e   : > { %p949_p11 = pneg %p948_p6 }
  0x40   : > { %p954_p13 = pnand %p952_p12, %p949_p11 }
  0x42   : > { %957 = shalt.err (!%p954_p13)
}
  0x43   : > { %s958_s25 = scalar_lea.vmem %s155_s8, 128  ;;  %p966_p1 = scmp.lt.s32.totalorder %s155_s8, %s155_s8 }
  0x44   : > { %p959_p8 = scmp.ne.s32.totalorder %s155_s8, %s958_s25  ;;  %p967_p4 = scmp.lt.s32.totalorder %s958_s25, %s958_s25 }
  0x46   : > { %p961_p9 = pnand %p959_p8, %p1233_p7  ;;  %p968_p0 = por %p967_p4, %p966_p1 }
  0x48   : > { %p962_p10 = pneg %p961_p9 }
  0x4a   : > { %p969_p3 = pnand %p968_p0, %p962_p10 }
  0x4c   : > { %972 = shalt.err (!%p969_p3)
}
  0x4d   : > { %s1115_s10 = smov 64   ;;  %s1116_s12 = smov 4  }
  0x4e   : > { %805 = dma.hbm_to_vmem [thread:$0]  (!%p1220_p2), %s1438_s0, 128, %s155_s8, [#allocation3], %s1115_s10, %s1115_s10, %s1116_s12  }
  0x4f   : > { %s1117_s22 = smov [#allocation8]   ;;  %s194_s9 = sand.u32 1, %s1109_s18  }
  0x50   : > { %s180_s23 = sshll.u32 %s1117_s22, 4  ;;  %s973_s25 = scalar_lea.hbm %s1441_s3, 256  ;;  %s181_s23 = int_to_ptr.vmem [resolvable:$true] %s180_s23 }
  0x51   : > { %p974_p3 = scmp.ne.s32.totalorder %s1441_s3, %s973_s25  ;;  %p980_p11 = scmp.lt.u32.totalorder %s973_s25, %s1441_s3 }
  0x53   : > { %p976_p5 = pnand %p974_p3, %p1233_p7 }
  0x55   : > { %p977_p6 = pneg %p976_p5 }
  0x57   : > { %p982_p12 = pnand %p980_p11, %p977_p6 }
  0x59   : > { %985 = shalt.err (!%p982_p12)
}
  0x5a   : > { %s986_s8 = scalar_lea.vmem %s181_s23, 256  ;;  %p994_p10 = scmp.lt.s32.totalorder %s181_s23, %s181_s23 }
  0x5b   : > { %p987_p13 = scmp.ne.s32.totalorder %s181_s23, %s986_s8  ;;  %p995_p1 = scmp.lt.s32.totalorder %s986_s8, %s986_s8 }
  0x5d   : > { %p989_p8 = pnand %p987_p13, %p1233_p7  ;;  %p996_p4 = por %p995_p1, %p994_p10 }
  0x5f   : > { %p990_p9 = pneg %p989_p8 }
  0x61   : > { %p997_p0 = pnand %p996_p4, %p990_p9 }
  0x63   : > { %1000 = shalt.err (!%p997_p0)
}
  0x64   : > { %s1466_s2 = smov 8   ;;  %s1467_s30 = smov 128  }
  0x65   : > { %811 = dma.hbm_to_vmem [thread:$0]  (!%p1220_p2), %s1441_s3, 256, %s181_s23, [#allocation9], %s1467_s30, %s1467_s30, %s1466_s2  }
  0x66   : > { %s196_s14 = sand.u32 1, %s1105_s17   ;;  %s778_s7 = sshll.u32 %s1109_s18, 8 }
  0x67   : > { %s784_s10 = smul.u32 208, %s196_s14  ;;  %s1305_s20 = scalar_lea.hbm %s1439_s1, %s778_s7 }
  0x68   : > { %s1309_s5 = scalar_lea.sflag [#allocation6], %s194_s9  ;;  %s1001_s25 = scalar_lea.hbm %s1305_s20, 3328 }
  0x69   : > { %s198_s6 = scalar_lea.vmem [#allocation5], %s784_s10  ;;  %p1002_p2 = scmp.ne.s32.totalorder %s1305_s20, %s1001_s25 }
  0x6a   : > { %s205_s22 = sshll.u32 %s198_s6, 4  ;;  %p1468_p7 = scmp.ne.s32.totalorder %s1465_s11, 0  ;;  %s1307_s22 = int_to_ptr.vmem [resolvable:$true] %s205_s22 }
  0x6b   : > { %s1006_s2 = scalar_lea.hbm %s1439_s1, 13312  ;;  %p1007_p11 = scmp.lt.u32.totalorder %s1305_s20, %s1439_s1 }
  0x6c   : > { %p1003_p3 = pneg %p1468_p7  ;;  %p1008_p12 = scmp.lt.u32.totalorder %s1006_s2, %s1001_s25 }
  0x6d   : > { %p1010_p8 = scmp.lt.u32.totalorder %s1001_s25, %s1305_s20 }
  0x6e   : > { %p1004_p5 = pnand %p1003_p3, %p1002_p2  ;;  %p1009_p13 = por %p1008_p12, %p1007_p11 }
  0x70   : > { %p1005_p6 = pneg %p1004_p5  ;;  %p1011_p9 = por %p1010_p8, %p1009_p13 }
  0x72   : > { %p1012_p10 = pnand %p1011_p9, %p1005_p6 }
  0x74   : > { %1015 = shalt.err (!%p1012_p10)
}
  0x75   : > { %s1016_s9 = scalar_lea.vmem %s1307_s22, 3328  ;;  %s1118_s24 = smov [#allocation5]  }
  0x76   : > { %p1017_p1 = scmp.ne.s32.totalorder %s1307_s22, %s1016_s9  ;;  %s1021_s14 = sshll.u32 %s1118_s24, 4  ;;  %s1022_s14 = int_to_ptr.vmem [resolvable:$false] %s1021_s14 }
  0x77   : > { %s1023_s7 = scalar_lea.vmem %s1022_s14, 6656  ;;  %p1024_p2 = scmp.lt.s32.totalorder %s1307_s22, %s1022_s14 }
  0x78   : > { %p1019_p4 = pnand %p1017_p1, %p1003_p3  ;;  %p1025_p5 = scmp.lt.s32.totalorder %s1023_s7, %s1016_s9 }
  0x7a   : > { %p1020_p0 = pneg %p1019_p4  ;;  %p1026_p11 = por %p1025_p5, %p1024_p2 }
  0x7c   : > { %p1027_p12 = pnand %p1026_p11, %p1020_p0 }
  0x7e   : > { %1030 = shalt.err (!%p1027_p12)
}
  0x7f   : > { %s1119_s10 = smov 1024   ;;  %s1120_s12 = smov 256  }
  0x80   : > { %s1121_s13 = smov 16   ;;  %p1469_p3 = scmp.ne.s32.totalorder %s1459_s29, 0 }
  0x81   : > { %815 = dma.hbm_to_vmem [thread:$0]  (!%p1468_p7), %s1305_s20, 3328, %s1307_s22, %s1309_s5, %s1119_s10, %s1120_s12, %s1121_s13  }
  0x82   : > { %217 = sbr.rel (%p1469_p3) target bundleno = 419 (0x1a3), region = 36  ;;  %p1470_p6 = scmp.eq.s32.totalorder (!%p1469_p3), %s1173_s19, 0 }
  0x89   : > { %1076 = dma.done.wait (%p1470_p6), [#allocation3], 128   ;;  %p1471_p13 = pmov %p1470_p6 }
  0x8a   : > { %s223_s6 = sand.u32 1, %s1173_s19   ;;  %s1345_s25 = sand.u32 1, %s1101_s16  }
  0x8b   : > { %1078 = vsyncadd (%p1471_p13), [#allocation3], 4294967168  ;;  %s785_s23 = smul.u32 208, %s1345_s25  ;;  %s224_s8 = scalar_lea.sflag [#allocation6], %s223_s6 }
  0x8c   : > { %p1472_p7 = scmp.ne.s32.totalorder %s1456_s26, 0 }
  0x8d   : > { %s1348_s11 = scalar_lea.vmem [#allocation5], %s785_s23 }
  0x8e   : > { %1080 = dma.done.wait (%p1472_p7), %s224_s8, 3328  }
  0x8f   : > { %1082 = vsyncadd (%p1472_p7), %s224_s8, 4294963968  ;;  %p1473_p8 = pmov %p1470_p6 }
  0x90   : > { %p1474_p9 = pmov %p1470_p6 }
  0x91   : > { %1084 = dma.done.wait (%p1473_p8), [#allocation6], 256  }
  0x92   : > { %1086 = vsyncadd (%p1474_p9), [#allocation6], 4294967040  ;;  %p1475_p10 = pmov %p1470_p6 }
  0x93   : > { %p1476_p1 = pmov %p1470_p6 }
  0x94   : > { %1088 = dma.done.wait (%p1475_p10), [#allocation9], 256  }
  0x95   : > { %1090 = vsyncadd (%p1476_p1), [#allocation9], 4294967040  ;;  %v1122_v0 = vmov 0   ;;  %v876_v1 = vld [vmem:[%s1348_s11 + $0x4] ss:$16 sps:$4 sm:$0xff]   ;;  %v530_v27 = vld [vmem:[#allocation7 + $0x8] sm:$0xff] }
  0x96   : > { %475 = vmatprep.mubr.bf16.mxu0 %v1122_v0  ;;  %518 = vmatprep.mubr.bf16.mxu1 %v1122_v0  ;;  %v878_v2 = vld [vmem:[%s1348_s11 + $0xc] ss:$16 sps:$4 sm:$0xff]   ;;  %v880_v3 = vld [vmem:[%s1348_s11] ss:$16 sps:$4 sm:$0xff]   ;;  %v881_v4 = vld [vmem:[%s1348_s11 + $0x8] ss:$16 sps:$4 sm:$0xff]  }
  0x97   : > { %874 = vset.pattern.permute.xlu0 %v1122_v0  ;;  %875 = vset.pattern.permute.xlu1 %v1122_v0  ;;  %v882_v5 = vld [vmem:[%s1348_s11 + $0x24] ss:$16 sps:$4 sm:$0xff]   ;;  %v884_v6 = vld [vmem:[%s1348_s11 + $0x2c] ss:$16 sps:$4 sm:$0xff]   ;;  %v886_v7 = vld [vmem:[%s1348_s11 + $0x20] ss:$16 sps:$4 sm:$0xff]  }
  0x98   : > { %443 = vmatprep.subr.bf16.mxu0 %v876_v1  ;;  %486 = vmatprep.subr.bf16.mxu1 %v878_v2  ;;  %v887_v8 = vld [vmem:[%s1348_s11 + $0x28] ss:$16 sps:$4 sm:$0xff]   ;;  %v888_v9 = vld [vmem:[%s1348_s11 + $0x44] ss:$16 sps:$4 sm:$0xff]   ;;  %v890_v10 = vld [vmem:[%s1348_s11 + $0x4c] ss:$16 sps:$4 sm:$0xff]  }
  0x99   : > { %444 = vmatpush1.bf16.msra.mxu0 %v880_v3  ;;  %487 = vmatpush1.bf16.msra.mxu1 %v881_v4  ;;  %v892_v11 = vld [vmem:[%s1348_s11 + $0x40] ss:$16 sps:$4 sm:$0xff]   ;;  %v893_v12 = vld [vmem:[%s1348_s11 + $0x48] ss:$16 sps:$4 sm:$0xff]   ;;  %v894_v13 = vld [vmem:[%s1348_s11 + $0x64] ss:$16 sps:$4 sm:$0xff]  }
  0x9a   : > { %445 = vmatprep.subr.bf16.mxu0 %v882_v5  ;;  %488 = vmatprep.subr.bf16.mxu1 %v884_v6  ;;  %v896_v14 = vld [vmem:[%s1348_s11 + $0x6c] ss:$16 sps:$4 sm:$0xff]   ;;  %v898_v15 = vld [vmem:[%s1348_s11 + $0x60] ss:$16 sps:$4 sm:$0xff]   ;;  %v899_v16 = vld [vmem:[%s1348_s11 + $0x68] ss:$16 sps:$4 sm:$0xff]  }
  0x9b   : > { %v900_v17 = vld [vmem:[%s1348_s11 + $0x84] ss:$16 sps:$4 sm:$0xff]   ;;  %v902_v18 = vld [vmem:[%s1348_s11 + $0x8c] ss:$16 sps:$4 sm:$0xff]   ;;  %v904_v19 = vld [vmem:[%s1348_s11 + $0x80] ss:$16 sps:$4 sm:$0xff]  }
  0x9c   : > { %v905_v20 = vld [vmem:[%s1348_s11 + $0x88] ss:$16 sps:$4 sm:$0xff]   ;;  %v906_v21 = vld [vmem:[%s1348_s11 + $0xa4] ss:$16 sps:$4 sm:$0xff]   ;;  %v908_v22 = vld [vmem:[%s1348_s11 + $0xac] ss:$16 sps:$4 sm:$0xff]  }
  0x9d   : > { %446 = vmatpush1.bf16.msra.mxu0 %v886_v7  ;;  %489 = vmatpush1.bf16.msra.mxu1 %v887_v8  ;;  %v289_v23 = vld [vmem:[%s1348_s11 + $0xc0] sm:$0x33]  ;;  %v290_v25 = vld [vmem:[%s1348_s11 + $0xc8] sm:$0x33]  ;;  %vm430_vm0 = vcmask 1041408   ;;  %vm426_vm1 = vcmask 818176  }
  0x9e   : > { %447 = vmatprep.subr.bf16.mxu0 %v888_v9  ;;  %490 = vmatprep.subr.bf16.mxu1 %v890_v10  ;;  %v529_v24 = vld [vmem:[#allocation7] sm:$0xff]  ;;  %v549_v26 = vld [vmem:[#allocation8] sm:$0xff]  ;;  %v911_v29 = vld [vmem:[%s1348_s11 + $0xa8] ss:$16 sps:$4 sm:$0xff]   ;;  %v762_v30 = vcombine.high %v289_v23, %v289_v23  ;;  %v764_v32 = vcombine.high %v290_v25, %v290_v25  ;;  %v761_v33 = vcombine.low %v289_v23, %v289_v23  ;;  %s735_s26 = sshll.u32 %s1345_s25, 5  ;;  %s783_s22 = sshll.u32 %s1173_s19, 8 }
  0x9f   : > { %533 = vperm.xlu0 %874, %v529_v24   ;;  %553 = vperm.xlu1 %875, %v549_v26   ;;  %v910_v28 = vld [vmem:[%s1348_s11 + $0xa0] ss:$16 sps:$4 sm:$0xff]   ;;  %v550_v31 = vld [vmem:[#allocation8 + $0x8] sm:$0xff]  ;;  %v763_v34 = vcombine.low %v290_v25, %v290_v25  ;;  %s259_s29 = scalar_lea.vmem [#allocation10], %s735_s26  ;;  %s1395_s30 = scalar_lea.hbm %s1442_s4, %s783_s22 }
  0xa0   : > { %v432_v35 = vsel %vm430_vm0, %v761_v33, 0  ;;  %v916_v37 = vld [vmem:[#allocation2] sm:$0xff]   ;;  %s619_s20 = sshll.u32 %s259_s29, 4  ;;  %s606_s19 = scalar_lea.sflag [#allocation4], %s1345_s25  ;;  %s1390_s20 = int_to_ptr.vmem [resolvable:$true] %s619_s20 }
  0xa1   : > { %448 = vmatpush1.bf16.msra.mxu0 %v892_v11  ;;  %491 = vmatpush1.bf16.msra.mxu1 %v893_v12  ;;  %v438_v36 = vsel %vm430_vm0, %v763_v34, 0  ;;  %s1031_s21 = scalar_lea.vmem %s1390_s20, 512  ;;  %p1477_p0 = scmp.ne.s32.totalorder %s1457_s27, 0 }
  0xa2   : > { %449 = vmatprep.subr.bf16.mxu0 %v894_v13  ;;  %492 = vmatprep.subr.bf16.mxu1 %v896_v14  ;;  %p1032_p4 = scmp.ne.s32.totalorder %s1390_s20, %s1031_s21  ;;  %s1123_s9 = smov [#allocation10]  }
  0xa3   : > { %538 = vperm.xlu0 %874, %v530_v27   ;;  %558 = vperm.xlu1 %875, %v550_v31   ;;  %s1035_s24 = sshll.u32 %s1123_s9, 4  ;;  %s1036_s24 = int_to_ptr.vmem [resolvable:$false] %s1035_s24 }
  0xa4   : > { %p1033_p2 = pnand %p1032_p4, %p1477_p0  ;;  %s1037_s14 = scalar_lea.vmem %s1036_s24, 1024 }
  0xa5   : > { %450 = vmatpush1.bf16.msra.mxu0 %v898_v15  ;;  %493 = vmatpush1.bf16.msra.mxu1 %v899_v16  ;;  %p1038_p11 = scmp.lt.s32.totalorder %s1390_s20, %s1036_s24  ;;  %p1039_p12 = scmp.lt.s32.totalorder %s1037_s14, %s1031_s21 }
  0xa6   : > { %451 = vmatprep.subr.bf16.mxu0 %v900_v17  ;;  %494 = vmatprep.subr.bf16.mxu1 %v902_v18  ;;  %p1034_p5 = pneg %p1033_p2 }
  0xa7   : > { %p1040_p3 = por %p1039_p12, %p1038_p11 }
  0xa9   : > { %452 = vmatpush1.bf16.msra.mxu0 %v904_v19  ;;  %495 = vmatpush1.bf16.msra.mxu1 %v905_v20  ;;  %p1041_p6 = pnand %p1040_p3, %p1034_p5 }
  0xaa   : > { %453 = vmatprep.subr.bf16.mxu0 %v906_v21  ;;  %496 = vmatprep.subr.bf16.mxu1 %v908_v22 }
  0xad   : > { %454 = vmatpush1.bf16.msra.mxu0 %v910_v28  ;;  %497 = vmatpush1.bf16.msra.mxu1 %v911_v29 }
  0xae   : > { %765 = vmatprep.subr.msk.bf16.mxu0 %vm430_vm0, %v762_v30  ;;  %767 = vmatprep.subr.msk.bf16.mxu1 %vm430_vm0, %v764_v32 }
  0xb1   : > { %456 = vmatpush1.bf16.msra.mxu0 %v432_v35  ;;  %499 = vmatpush1.bf16.msra.mxu1 %v438_v36 }
  0xb4   : > { %766 = vmatmul.mubr.msk.bf16.vlgmr.msra.gmra.mrb[0].mxu0 %vm426_vm1, %v916_v37  ;;  %768 = vmatmul.mubr.msk.bf16.vlgmr.msra.gmra.mrb[0].mxu1 %vm426_vm1, %v916_v37 }
 0x11e   : > { %v534_v38 = vpop.permute.xlu0 %533  ;;  %v554_v39 = vpop.permute.xlu1 %553 }
 0x122   : > { %v539_v40 = vpop.permute.xlu0 %538  ;;  %v559_v57 = vpop.permute.xlu1 %558 }
 0x187   : > { %v477_v41 = vpop.f32.mrb[0].mxu0  ;;  %v520_v42 = vpop.f32.mrb[0].mxu1 }
 0x188   : > { %v541_v43 = vmul.f32 %v534_v38, %v477_v41  ;;  %v543_v44 = vmul.f32 %v534_v38, %v520_v42  ;;  %v479_v45 = vpop.f32.mrb[1].mxu0  ;;  %v522_v46 = vpop.f32.mrb[1].mxu1 }
 0x189   : > { %v542_v47 = vmul.f32 %v534_v38, %v479_v45  ;;  %v544_v48 = vmul.f32 %v534_v38, %v522_v46  ;;  %v481_v49 = vpop.f32.mrb[2].mxu0  ;;  %v524_v50 = vpop.f32.mrb[2].mxu1 }
 0x18a   : > { %v561_v51 = vadd.f32 %v554_v39, %v541_v43  ;;  %v563_v52 = vadd.f32 %v554_v39, %v543_v44  ;;  %v545_v53 = vmul.f32 %v539_v40, %v481_v49  ;;  %v547_v54 = vmul.f32 %v539_v40, %v524_v50  ;;  %v483_v55 = vpop.f32.mrb[3].mxu0  ;;  %v526_v56 = vpop.f32.mrb[3].mxu1 }
 0x18b   : > { %v562_v58 = vadd.f32 %v554_v39, %v542_v47  ;;  %v564_v59 = vadd.f32 %v554_v39, %v544_v48  ;;  %v546_v60 = vmul.f32 %v539_v40, %v483_v55  ;;  %v548_v61 = vmul.f32 %v539_v40, %v526_v56 }
 0x18c   : > { %v569_v62 = vmax.f32 %v561_v51, 0.0  ;;  %v571_v63 = vmax.f32 %v563_v52, 0.0  ;;  %v565_v0 = vadd.f32 %v559_v57, %v545_v53  ;;  %v567_v1 = vadd.f32 %v559_v57, %v547_v54 }
 0x18d   : > { %v570_v2 = vmax.f32 %v562_v58, 0.0  ;;  %v572_v3 = vmax.f32 %v564_v59, 0.0  ;;  %v566_v4 = vadd.f32 %v559_v57, %v546_v60  ;;  %v568_v5 = vadd.f32 %v559_v57, %v548_v61 }
 0x18e   : > { %v573_v6 = vmax.f32 %v565_v0, 0.0  ;;  %v575_v7 = vmax.f32 %v567_v1, 0.0 }
 0x18f   : > { %v779_v8 = vpack.c.bf16 %v570_v2, %v569_v62  ;;  %v780_v9 = vpack.c.bf16 %v572_v3, %v571_v63  ;;  %v574_v10 = vmax.f32 %v566_v4, 0.0  ;;  %v576_v11 = vmax.f32 %v568_v5, 0.0 }
 0x191   : > { %601 = vst [vmem:[%s259_s29] sm:$0xff] %v779_v8  ;;  %602 = vst [vmem:[%s259_s29 + $0x8] sm:$0xff] %v780_v9  ;;  %v781_v12 = vpack.c.bf16 %v574_v10, %v573_v6  ;;  %v782_v13 = vpack.c.bf16 %v576_v11, %v575_v7 }
 0x193   : > { %603 = vst [vmem:[%s259_s29 + $0x10] sm:$0xff] %v781_v12  ;;  %604 = vst [vmem:[%s259_s29 + $0x18] sm:$0xff] %v782_v13 }
 0x194   : > { %1044 = shalt.err (!%p1041_p6)
}
 0x195   : > { %s1045_s7 = scalar_lea.hbm %s1395_s30, 512  ;;  %s1049_s13 = scalar_lea.hbm %s1442_s4, 2048 }
 0x196   : > { %p1046_p13 = scmp.ne.s32.totalorder %s1395_s30, %s1045_s7  ;;  %p1050_p9 = scmp.lt.u32.totalorder %s1395_s30, %s1442_s4 }
 0x197   : > { %p1051_p10 = scmp.lt.u32.totalorder %s1049_s13, %s1045_s7  ;;  %p1053_p4 = scmp.lt.u32.totalorder %s1045_s7, %s1395_s30 }
 0x198   : > { %p1047_p7 = pnand %p1046_p13, %p1477_p0 }
 0x199   : > { %p1052_p1 = por %p1051_p10, %p1050_p9 }
 0x19a   : > { %p1048_p8 = pneg %p1047_p7 }
 0x19b   : > { %p1054_p2 = por %p1053_p4, %p1052_p1 }
 0x19d   : > { %p1055_p5 = pnand %p1054_p2, %p1048_p8 }
 0x19f   : > { %1058 = shalt.err (!%p1055_p5)
}
 0x1a0   : > { %s1124_s8 = smov 256   ;;  %s1125_s11 = smov 1024  }
 0x1a1   : > { %s1126_s26 = smov 16  }
 0x1a2   : > { %800 = dma.vmem_to_hbm [thread:$0]  (%p1477_p0), %s1390_s20, 512, %s1395_s30, %s606_s19, %s1124_s8, %s1125_s11, %s1126_s26  }
 0x1a3 PF: > { %p827_p11 = scmp.ge.s32.totalorder %s1109_s18, 2  ;;  %s634_s29 = sand.u32 1, %s1097_s15  }
 0x1a4   : > { %p1478_p12 = scmp.ne.s32.totalorder %s1458_s28, 0  ;;  %s635_s22 = scalar_lea.sflag [#allocation4], %s634_s29 }
 0x1a6   : > { %p817_p3 = pnand %p827_p11, %p1478_p12 }
 0x1a8   : > { %1092 = dma.done.wait (!%p817_p3), %s635_s22, 512  }
 0x1a9   : > { %1094 = vsyncadd (!%p817_p3), %s635_s22, 4294966784  ;;  %s1479_s18 = sld [smem:[#allocation16_spill]]  ;;  %s1480_s5 = sld [smem:[#allocation17_spill]] }
 0x1aa   : > { %s1481_s15 = smov %s1101_s16  ;;  %s1482_s16 = smov %s1105_s17 }
 0x1af   : > { %p19_p6 = scmp.ge.s32.totalorder %s1479_s18, 6   ;;  %s1483_s17 = smov %s1480_s5 }
 0x1b1   :  { %21 = sbr.rel (!%p19_p6) target bundleno = 9 (0x9), region = 94 }
 0x1b8   :  { %640 = vsyncpa [#allocation3], 1 }
 0x1b9   :  { %642 = vsyncpa [#allocation3 + $0x1], 1 }
 0x1ba   :  { %643 = vsyncpa [#allocation6], 1 }
 0x1bb   :  { %645 = vsyncpa [#allocation6 + $0x1], 1 }
 0x1bc   :  { %646 = vsyncpa [#allocation9], 1 }
 0x1bd   :  { %647 = vsyncpa [#allocation4], 1 }
 0x1be   :  { %649 = vsyncpa [#allocation4 + $0x1], 1 }

// kernel: net_forward.5
= control target key start
LH: loop header
LB: loop body
LE: loop exit
PB: predicated region body
PF: predicated region fallthrough
CT: control target
= control target key end

     0   :  { %9 = vsyncpa [#allocation3], 0  ;;  %s1500_s0 = inlined_call_operand.hbm [shape: bf16[32,400], index: 0, kind: input, shape index: {}]   ;;  %s1501_s1 = inlined_call_operand.hbm [shape: bf16[400,384], index: 1, kind: input, shape index: {}]   ;;  %s1502_s2 = inlined_call_operand.hbm [shape: f32[32,1], index: 2, kind: input, shape index: {}]   ;;  %s1503_s3 = inlined_call_operand.hbm [shape: f32[32,1], index: 3, kind: input, shape index: {}]   ;;  %s1504_s4 = inlined_call_operand.hbm [shape: bf16[32,384], index: 4, kind: output, shape index: {}]  }
   0x1   :  { %10 = vsyncpa [#allocation6], 0 }
   0x2   :  { %11 = vsyncpa [#allocation9], 0 }
   0x3   :  { %12 = vsyncpa [#allocation4], 0  ;;  %s1365_s15 = smov [#allocation5]   ;;  %s1247_s19 = scalar_lea.hbm %s1501_s1, 9600 }
   0x4   :  { %s30_s16 = sshll.u32 %s1365_s15, 4  ;;  %p1248_p0 = scmp.ne.s32.totalorder %s1501_s1, %s1247_s19  ;;  %s31_s16 = int_to_ptr.vmem [resolvable:$true] %s30_s16 }
   0x5   :  { %p1251_p1 = scmp.lt.u32.totalorder %s1247_s19, %s1501_s1 }
   0x7   :  { %p1253_p2 = pnand %p1251_p1, %p1248_p0 }
   0x9   :  { %1256 = shalt.err (!%p1253_p2)
}
   0xa   :  { %s1257_s24 = scalar_lea.vmem %s31_s16, 9600  ;;  %p1262_p4 = scmp.lt.s32.totalorder %s31_s16, %s31_s16 }
   0xb   :  { %p1258_p3 = scmp.ne.s32.totalorder %s31_s16, %s1257_s24  ;;  %p1263_p5 = scmp.lt.s32.totalorder %s1257_s24, %s1257_s24 }
   0xd   :  { %p1264_p6 = por %p1263_p5, %p1262_p4 }
   0xf   :  { %p1265_p7 = pnand %p1264_p6, %p1258_p3 }
  0x11   :  { %1268 = shalt.err (!%p1265_p7)
}
  0x12   :  { %s1366_s25 = smov 192   ;;  %s1367_s26 = smov 12  }
  0x13   :  { %36 = dma.hbm_to_vmem [thread:$0]  %s1501_s1, 9600, %s31_s16, [#allocation6], %s1366_s25, %s1366_s25, %s1367_s26  }
  0x14   :  { %s1368_s29 = smov [#allocation2]   ;;  %s1269_s7 = scalar_lea.hbm %s1500_s0, 1024 }
  0x15   :  { %s18_s30 = sshll.u32 %s1368_s29, 4  ;;  %p1270_p8 = scmp.ne.s32.totalorder %s1500_s0, %s1269_s7  ;;  %s19_s30 = int_to_ptr.vmem [resolvable:$true] %s18_s30 }
  0x16   :  { %p1273_p9 = scmp.lt.u32.totalorder %s1269_s7, %s1500_s0 }
  0x18   :  { %p1275_p10 = pnand %p1273_p9, %p1270_p8 }
  0x1a   :  { %1278 = shalt.err (!%p1275_p10)
}
  0x1b   :  { %s1279_s12 = scalar_lea.vmem %s19_s30, 1024  ;;  %p1284_p12 = scmp.lt.s32.totalorder %s19_s30, %s19_s30 }
  0x1c   :  { %p1280_p11 = scmp.ne.s32.totalorder %s19_s30, %s1279_s12  ;;  %p1285_p13 = scmp.lt.s32.totalorder %s1279_s12, %s1279_s12 }
  0x1e   :  { %p1286_p0 = por %p1285_p13, %p1284_p12 }
  0x20   :  { %p1287_p1 = pnand %p1286_p0, %p1280_p11 }
  0x22   :  { %1290 = shalt.err (!%p1287_p1)
}
  0x23   :  { %s1369_s1 = smov 256   ;;  %s1370_s13 = smov 16  }
  0x24   :  { %24 = dma.hbm_to_vmem [thread:$0]  %s1500_s0, 1024, %s19_s30, [#allocation3], %s1369_s1, %s1369_s1, %s1370_s13  }
  0x25   :  { %s1371_s16 = smov [#allocation7]   ;;  %s1291_s20 = scalar_lea.hbm %s1502_s2, 512 }
  0x26   :  { %s42_s17 = sshll.u32 %s1371_s16, 4  ;;  %p1292_p2 = scmp.ne.s32.totalorder %s1502_s2, %s1291_s20  ;;  %s43_s17 = int_to_ptr.vmem [resolvable:$true] %s42_s17 }
  0x27   :  { %p1295_p3 = scmp.lt.u32.totalorder %s1291_s20, %s1502_s2 }
  0x29   :  { %p1297_p4 = pnand %p1295_p3, %p1292_p2 }
  0x2b   :  { %1300 = shalt.err (!%p1297_p4)
}
  0x2c   :  { %s1301_s27 = scalar_lea.vmem %s43_s17, 512  ;;  %p1306_p6 = scmp.lt.s32.totalorder %s43_s17, %s43_s17 }
  0x2d   :  { %p1302_p5 = scmp.ne.s32.totalorder %s43_s17, %s1301_s27  ;;  %p1307_p7 = scmp.lt.s32.totalorder %s1301_s27, %s1301_s27 }
  0x2f   :  { %p1308_p8 = por %p1307_p7, %p1306_p6 }
  0x31   :  { %p1309_p9 = pnand %p1308_p8, %p1302_p5 }
  0x33   :  { %1312 = shalt.err (!%p1309_p9)
}
  0x34   :  { %s1372_s0 = smov 128   ;;  %s1373_s28 = smov 8  }
  0x35   :  { %48 = dma.hbm_to_vmem [thread:$0]  %s1502_s2, 512, %s43_s17, [#allocation6], %s1372_s0, %s1372_s0, %s1373_s28  }
  0x36   :  { %s1374_s5 = smov [#allocation8]   ;;  %s1313_s9 = scalar_lea.hbm %s1503_s3, 512 }
  0x37   :  { %s54_s6 = sshll.u32 %s1374_s5, 4  ;;  %p1314_p10 = scmp.ne.s32.totalorder %s1503_s3, %s1313_s9  ;;  %s55_s6 = int_to_ptr.vmem [resolvable:$true] %s54_s6 }
  0x38   :  { %p1317_p11 = scmp.lt.u32.totalorder %s1313_s9, %s1503_s3 }
  0x3a   :  { %p1319_p12 = pnand %p1317_p11, %p1314_p10 }
  0x3c   :  { %1322 = shalt.err (!%p1319_p12)
}
  0x3d   :  { %s1323_s13 = scalar_lea.vmem %s55_s6, 512  ;;  %p1328_p0 = scmp.lt.s32.totalorder %s55_s6, %s55_s6 }
  0x3e   :  { %p1324_p13 = scmp.ne.s32.totalorder %s55_s6, %s1323_s13  ;;  %p1329_p1 = scmp.lt.s32.totalorder %s1323_s13, %s1323_s13 }
  0x40   :  { %p1330_p2 = por %p1329_p1, %p1328_p0 }
  0x42   :  { %p1331_p3 = pnand %p1330_p2, %p1324_p13 }
  0x44   :  { %1334 = shalt.err (!%p1331_p3)
}
  0x45   :  { %60 = dma.hbm_to_vmem [thread:$0]  %s1503_s3, 512, %s55_s6, [#allocation9], %s1372_s0, %s1372_s0, %s1373_s28  }
  0x46   :  { %1357 = dma.done.wait [#allocation3], 1024  }
  0x47   :  { %1358 = vsyncadd [#allocation3], 4294966272 }
  0x48   :  { %1359 = dma.done.wait [#allocation6], 10112  }
  0x49   :  { %1360 = vsyncadd [#allocation6], 4294957184 }
  0x4a   :  { %1361 = dma.done.wait [#allocation9], 512  }
  0x4b   :  { %1362 = vsyncadd [#allocation9], 4294966784  ;;  %v1375_v0 = vmov 0   ;;  %v1135_v1 = vld [vmem:[#allocation5 + $0x4] ss:$12 sps:$4 sm:$0xff]   ;;  %vm620_vm0 = vcmask 130048  }
  0x4c   :  { %1133 = vset.pattern.permute.xlu0 %v1375_v0  ;;  %1134 = vset.pattern.permute.xlu1 %v1375_v0  ;;  %v1137_v2 = vld [vmem:[#allocation5 + $0xc8] ss:$12 sps:$4 sm:$0xff]   ;;  %v1138_v3 = vld [vmem:[#allocation5] ss:$12 sps:$4 sm:$0xff]   ;;  %v1143_v7 = vld [vmem:[#allocation5 + $0x18] ss:$12 sps:$4 sm:$0xff]  }
  0x4d   :  { %627 = vmatprep.subr.bf16.mxu0 %v1135_v1  ;;  %1085 = vmatprep.subr.bf16.mxu1 %v1137_v2  ;;  %v1139_v4 = vld [vmem:[#allocation5 + $0x8] ss:$12 sps:$4 sm:$0xff]   ;;  %v1142_v6 = vld [vmem:[#allocation5 + $0xe0] ss:$12 sps:$4 sm:$0xff]   ;;  %v1147_v10 = vld [vmem:[#allocation5 + $0xf8] ss:$12 sps:$4 sm:$0xff]  }
  0x4e   :  { %628 = vmatpush1.bf16.msra.mxu0 %v1138_v3  ;;  %v1140_v5 = vld [vmem:[#allocation5 + $0x1c] ss:$12 sps:$4 sm:$0xff]   ;;  %1086 = vmatpush3.bf16.msra.mxu1 %v1139_v4  ;;  %v1144_v8 = vld [vmem:[#allocation5 + $0x20] ss:$12 sps:$4 sm:$0xff]   ;;  %v1149_v12 = vld [vmem:[#allocation5 + $0x38] ss:$12 sps:$4 sm:$0xff]  }
  0x4f   :  { %629 = vmatprep.subr.bf16.mxu0 %v1140_v5  ;;  %1087 = vmatprep.subr.bf16.mxu1 %v1142_v6  ;;  %v1145_v9 = vld [vmem:[#allocation5 + $0x34] ss:$12 sps:$4 sm:$0xff]   ;;  %v1148_v11 = vld [vmem:[#allocation5 + $0x30] ss:$12 sps:$4 sm:$0xff]   ;;  %v1150_v13 = vld [vmem:[#allocation5 + $0x4c] ss:$12 sps:$4 sm:$0xff]  }
  0x50   :  { %v1152_v14 = vld [vmem:[#allocation5 + $0x110] ss:$12 sps:$4 sm:$0xff]   ;;  %v1153_v15 = vld [vmem:[#allocation5 + $0x48] ss:$12 sps:$4 sm:$0xff]   ;;  %v1158_v19 = vld [vmem:[#allocation5 + $0x60] ss:$12 sps:$4 sm:$0xff]  }
  0x51   :  { %v1154_v16 = vld [vmem:[#allocation5 + $0x50] ss:$12 sps:$4 sm:$0xff]   ;;  %v1157_v18 = vld [vmem:[#allocation5 + $0x128] ss:$12 sps:$4 sm:$0xff]   ;;  %v1162_v22 = vld [vmem:[#allocation5 + $0x140] ss:$12 sps:$4 sm:$0xff]  }
  0x52   :  { %630 = vmatpush1.bf16.msra.mxu0 %v1143_v7  ;;  %1088 = vmatpush3.bf16.msra.mxu1 %v1144_v8  ;;  %v1155_v17 = vld [vmem:[#allocation5 + $0x64] ss:$12 sps:$4 sm:$0xff]   ;;  %v1159_v20 = vld [vmem:[#allocation5 + $0x68] ss:$12 sps:$4 sm:$0xff]   ;;  %v1164_v24 = vld [vmem:[#allocation5 + $0x80] ss:$12 sps:$4 sm:$0xff]  }
  0x53   :  { %631 = vmatprep.subr.bf16.mxu0 %v1145_v9  ;;  %1089 = vmatprep.subr.bf16.mxu1 %v1147_v10  ;;  %v1160_v21 = vld [vmem:[#allocation5 + $0x7c] ss:$12 sps:$4 sm:$0xff]   ;;  %v1163_v23 = vld [vmem:[#allocation5 + $0x78] ss:$12 sps:$4 sm:$0xff]   ;;  %v1165_v25 = vld [vmem:[#allocation5 + $0x94] ss:$12 sps:$4 sm:$0xff]  }
  0x54   :  { %v1167_v26 = vld [vmem:[#allocation5 + $0x158] ss:$12 sps:$4 sm:$0xff]   ;;  %v1168_v27 = vld [vmem:[#allocation5 + $0x90] ss:$12 sps:$4 sm:$0xff]   ;;  %v1173_v31 = vld [vmem:[#allocation5 + $0xa8] ss:$12 sps:$4 sm:$0xff]  }
  0x55   :  { %v1169_v28 = vld [vmem:[#allocation5 + $0x98] ss:$12 sps:$4 sm:$0xff]   ;;  %v1172_v30 = vld [vmem:[#allocation5 + $0x170] ss:$12 sps:$4 sm:$0xff]   ;;  %v1180_v36 = vld [vmem:[#allocation5 + $0xc0] ss:$12 sps:$4 sm:$0xff]  }
  0x56   :  { %632 = vmatpush1.bf16.msra.mxu0 %v1148_v11  ;;  %1090 = vmatpush3.bf16.msra.mxu1 %v1149_v12  ;;  %v1170_v29 = vld [vmem:[#allocation5 + $0xac] ss:$12 sps:$4 sm:$0xff]   ;;  %v1174_v32 = vld [vmem:[#allocation5 + $0xb0] ss:$12 sps:$4 sm:$0xff]   ;;  %v1179_v33 = vld [vmem:[#allocation2 + $0x4] ss:$16 sps:$4 sm:$0xff]  }
  0x57   :  { %633 = vmatprep.subr.bf16.mxu0 %v1150_v13  ;;  %1091 = vmatprep.subr.bf16.mxu1 %v1152_v14  ;;  %v1175_v34 = vld [vmem:[#allocation5 + $0xc4] ss:$12 sps:$4 sm:$0xff]   ;;  %v1181_v37 = vld [vmem:[#allocation5 + $0x188] ss:$12 sps:$4 sm:$0xff]   ;;  %v1185_v40 = vld [vmem:[#allocation5 + $0x1a0] ss:$12 sps:$4 sm:$0xff]  }
  0x58   :  { %765 = vmatprep.mubr.bf16.mxu1 %v1179_v33  ;;  %v1455_v35 = vld [vmem:[#allocation2] ss:$16 sps:$4 sm:$0xff]   ;;  %659 = vmatprep.mubr.bf16.mxu0 %v1179_v33  ;;  %v1182_v38 = vld [vmem:[#allocation5 + $0xdc] ss:$12 sps:$4 sm:$0xff]   ;;  %v1184_v39 = vld [vmem:[#allocation5 + $0xd8] ss:$12 sps:$4 sm:$0xff]  }
  0x59   :  { %v1186_v41 = vld [vmem:[#allocation5 + $0xf4] ss:$12 sps:$4 sm:$0xff]   ;;  %v1188_v42 = vld [vmem:[#allocation5 + $0xf0] ss:$12 sps:$4 sm:$0xff]   ;;  %v1189_v43 = vld [vmem:[#allocation5 + $0x1b8] ss:$12 sps:$4 sm:$0xff]  }
  0x5a   :  { %634 = vmatpush1.bf16.msra.mxu0 %v1153_v15  ;;  %1092 = vmatpush3.bf16.msra.mxu1 %v1154_v16  ;;  %v1190_v44 = vld [vmem:[#allocation5 + $0x10c] ss:$12 sps:$4 sm:$0xff]   ;;  %v1192_v45 = vld [vmem:[#allocation5 + $0x108] ss:$12 sps:$4 sm:$0xff]   ;;  %v1193_v46 = vld [vmem:[#allocation5 + $0x1d0] ss:$12 sps:$4 sm:$0xff]  }
  0x5b   :  { %635 = vmatprep.subr.bf16.mxu0 %v1155_v17  ;;  %1093 = vmatprep.subr.bf16.mxu1 %v1157_v18  ;;  %v1194_v47 = vld [vmem:[#allocation5 + $0x124] ss:$12 sps:$4 sm:$0xff]   ;;  %v1196_v50 = vld [vmem:[#allocation5 + $0x120] ss:$12 sps:$4 sm:$0xff]   ;;  %v1197_v51 = vld [vmem:[#allocation5 + $0x1e8] ss:$12 sps:$4 sm:$0xff]  }
  0x5c   :  { %v1206_v48 = vld [vmem:[#allocation2 + $0x24] ss:$16 sps:$4 sm:$0xff]   ;;  %v1462_v49 = vld [vmem:[#allocation2 + $0x20] ss:$16 sps:$4 sm:$0xff]   ;;  %v1198_v52 = vld [vmem:[#allocation5 + $0x13c] ss:$12 sps:$4 sm:$0xff]  }
  0x5d   :  { %v1466_v53 = vld [vmem:[#allocation2 + $0xc] ss:$16 sps:$4 sm:$0xff]   ;;  %v1200_v54 = vld [vmem:[#allocation5 + $0x138] ss:$12 sps:$4 sm:$0xff]   ;;  %v1202_v56 = vld [vmem:[#allocation5 + $0x154] ss:$12 sps:$4 sm:$0xff]  }
  0x5e   :  { %636 = vmatpush1.bf16.msra.mxu0 %v1158_v19  ;;  %1094 = vmatpush3.bf16.msra.mxu1 %v1159_v20  ;;  %v1201_v55 = vld [vmem:[#allocation5 + $0x200] ss:$12 sps:$4 sm:$0xff]   ;;  %v1204_v57 = vld [vmem:[#allocation5 + $0x150] ss:$12 sps:$4 sm:$0xff]   ;;  %v1205_v58 = vld [vmem:[#allocation5 + $0x218] ss:$12 sps:$4 sm:$0xff]  }
  0x5f   :  { %637 = vmatprep.subr.bf16.mxu0 %v1160_v21  ;;  %1095 = vmatprep.subr.bf16.mxu1 %v1162_v22  ;;  %v1208_v59 = vld [vmem:[#allocation5 + $0x16c] ss:$12 sps:$4 sm:$0xff]   ;;  %v1211_v60 = vld [vmem:[#allocation5 + $0x168] ss:$12 sps:$4 sm:$0xff]   ;;  %v1212_v61 = vld [vmem:[#allocation5 + $0x230] ss:$12 sps:$4 sm:$0xff]  }
  0x60   :  { %v1215_v62 = vld [vmem:[#allocation5 + $0x184] ss:$12 sps:$4 sm:$0xff]   ;;  %v831_v63 = vld [vmem:[#allocation7] sm:$0xff]  ;;  %v1213_v1 = vld [vmem:[#allocation5 + $0x180] ss:$12 sps:$4 sm:$0xff]   ;;  %s1376_s3 = smov [#allocation10]  }
  0x61   :  { %837 = vperm.xlu0 %1133, %v831_v63   ;;  %v833_v2 = vld [vmem:[#allocation7 + $0x10] sm:$0xff]  ;;  %v832_v5 = vld [vmem:[#allocation7 + $0x8] sm:$0xff]  ;;  %v834_v6 = vld [vmem:[#allocation7 + $0x18] sm:$0xff]  ;;  %s968_s15 = sshll.u32 %s1376_s3, 4  ;;  %s969_s15 = int_to_ptr.vmem [resolvable:$true] %s968_s15 }
  0x62   :  { %638 = vmatpush1.bf16.msra.mxu0 %v1163_v23  ;;  %1096 = vmatpush3.bf16.msra.mxu1 %v1164_v24  ;;  %v1216_v3 = vld [vmem:[#allocation5 + $0x248] ss:$12 sps:$4 sm:$0xff]   ;;  %v1220_v8 = vld [vmem:[#allocation5 + $0x198] ss:$12 sps:$4 sm:$0xff]   ;;  %v1238_v10 = vld [vmem:[#allocation2 + $0x2c] ss:$16 sps:$4 sm:$0xff]   ;;  %p1340_p5 = scmp.lt.s32.totalorder %s969_s15, %s969_s15 }
  0x63   :  { %639 = vmatprep.subr.bf16.mxu0 %v1165_v25  ;;  %1097 = vmatprep.subr.bf16.mxu1 %v1167_v26  ;;  %v1222_v4 = vld [vmem:[#allocation5 + $0x19c] ss:$12 sps:$4 sm:$0xff]   ;;  %v1225_v9 = vld [vmem:[#allocation5 + $0x1b4] ss:$12 sps:$4 sm:$0xff]   ;;  %v1228_v13 = vld [vmem:[#allocation5 + $0x1cc] ss:$12 sps:$4 sm:$0xff]  }
  0x64   :  { %847 = vperm.xlu1 %1134, %v833_v2   ;;  %v1217_v7 = vld [vmem:[#allocation2 + $0x8] ss:$16 sps:$4 sm:$0xff]   ;;  %v868_v12 = vld [vmem:[#allocation8 + $0x8] sm:$0xff]  ;;  %v870_v14 = vld [vmem:[#allocation8 + $0x18] sm:$0xff]  ;;  %s1335_s16 = scalar_lea.vmem %s969_s15, 768 }
  0x65   :  { %842 = vperm.xlu0 %1133, %v832_v5   ;;  %v867_v11 = vld [vmem:[#allocation8] sm:$0xff]  ;;  %v869_v15 = vld [vmem:[#allocation8 + $0x10] sm:$0xff]  ;;  %v1231_v18 = vld [vmem:[#allocation5 + $0x1e4] ss:$12 sps:$4 sm:$0xff]   ;;  %p1336_p4 = scmp.ne.s32.totalorder %s969_s15, %s1335_s16  ;;  %p1341_p6 = scmp.lt.s32.totalorder %s1335_s16, %s1335_s16 }
  0x66   :  { %640 = vmatpush1.bf16.msra.mxu0 %v1168_v27  ;;  %1098 = vmatpush3.bf16.msra.mxu1 %v1169_v28  ;;  %v1226_v16 = vld [vmem:[#allocation5 + $0x1c8] ss:$12 sps:$4 sm:$0xff]   ;;  %v1229_v19 = vld [vmem:[#allocation5 + $0x1e0] ss:$12 sps:$4 sm:$0xff]   ;;  %v1232_v21 = vld [vmem:[#allocation5 + $0x1f8] ss:$12 sps:$4 sm:$0xff]  }
  0x67   :  { %641 = vmatprep.subr.bf16.mxu0 %v1170_v29  ;;  %1099 = vmatprep.subr.bf16.mxu1 %v1172_v30  ;;  %v1240_v17 = vld [vmem:[#allocation2 + $0x28] ss:$16 sps:$4 sm:$0xff]   ;;  %v1237_v22 = vld [vmem:[#allocation5 + $0x214] ss:$12 sps:$4 sm:$0xff]   ;;  %v1235_v23 = vld [vmem:[#allocation5 + $0x210] ss:$12 sps:$4 sm:$0xff]   ;;  %p1342_p7 = por %p1341_p6, %p1340_p5 }
  0x68   :  { %852 = vperm.xlu1 %1134, %v834_v6   ;;  %v1234_v20 = vld [vmem:[#allocation5 + $0x1fc] ss:$12 sps:$4 sm:$0xff]   ;;  %v1243_v24 = vld [vmem:[#allocation5 + $0x22c] ss:$12 sps:$4 sm:$0xff]   ;;  %v1246_v26 = vld [vmem:[#allocation5 + $0x244] ss:$12 sps:$4 sm:$0xff]  }
  0x69   :  { %873 = vperm.xlu0 %1133, %v867_v11   ;;  %v1241_v25 = vld [vmem:[#allocation5 + $0x228] ss:$12 sps:$4 sm:$0xff]   ;;  %v1244_v27 = vld [vmem:[#allocation5 + $0x240] ss:$12 sps:$4 sm:$0xff]   ;;  %p1343_p8 = pnand %p1342_p7, %p1336_p4 }
  0x6a   :  { %642 = vmatpush1.bf16.msra.mxu0 %v1173_v31  ;;  %1100 = vmatpush3.bf16.msra.mxu1 %v1174_v32 }
  0x6b   :  { %643 = vmatprep.subr.bf16.mxu0 %v1175_v34  ;;  %782 = vmatprep.subr.bf16.mxu1 %v1375_v0 }
  0x6c   :  { %878 = vperm.xlu1 %1134, %v868_v12  }
  0x6d   :  { %766 = vmatmul.mubr.bf16.vlgmr.msra.gmra.mrb[0].mxu1 %v1455_v35  ;;  %883 = vperm.xlu0 %1133, %v869_v15  }
  0x6e   :  { %644 = vmatpush1.bf16.msra.mxu0 %v1180_v36  ;;  %783 = vmatpush1.bf16.msra.mxu1 %v1181_v37 }
  0x6f   :  { %645 = vmatprep.subr.bf16.mxu0 %v1182_v38  ;;  %784 = vmatprep.subr.bf16.mxu1 %v1375_v0 }
  0x70   :  { %773 = vmatprep.mubr.bf16.mxu1 %v1206_v48  ;;  %888 = vperm.xlu1 %1134, %v870_v14  }
  0x72   :  { %646 = vmatpush1.bf16.msra.mxu0 %v1184_v39  ;;  %785 = vmatpush1.bf16.msra.mxu1 %v1185_v40 }
  0x73   :  { %647 = vmatprep.subr.bf16.mxu0 %v1186_v41  ;;  %786 = vmatprep.subr.bf16.mxu1 %v1375_v0 }
  0x75   :  { %774 = vmatmul.mubr.bf16.gmra.mrb[4].mxu1 %v1462_v49 }
  0x76   :  { %648 = vmatpush1.bf16.msra.mxu0 %v1188_v42  ;;  %787 = vmatpush1.bf16.msra.mxu1 %v1189_v43 }
  0x77   :  { %649 = vmatprep.subr.bf16.mxu0 %v1190_v44  ;;  %788 = vmatprep.subr.bf16.mxu1 %v1375_v0 }
  0x78   :  { %1067 = vmatprep.mubr.msk.bf16.mxu1 %vm620_vm0, %v1466_v53 }
  0x7a   :  { %650 = vmatpush1.bf16.msra.mxu0 %v1192_v45  ;;  %789 = vmatpush1.bf16.msra.mxu1 %v1193_v46 }
  0x7b   :  { %651 = vmatprep.subr.bf16.mxu0 %v1194_v47  ;;  %790 = vmatprep.subr.bf16.mxu1 %v1375_v0 }
  0x7e   :  { %652 = vmatpush1.bf16.msra.mxu0 %v1196_v50  ;;  %791 = vmatpush1.bf16.msra.mxu1 %v1197_v51 }
  0x7f   :  { %653 = vmatprep.subr.bf16.mxu0 %v1198_v52  ;;  %792 = vmatprep.subr.bf16.mxu1 %v1375_v0 }
  0x82   :  { %654 = vmatpush1.bf16.msra.mxu0 %v1200_v54  ;;  %793 = vmatpush1.bf16.msra.mxu1 %v1201_v55 }
  0x83   :  { %655 = vmatprep.subr.bf16.mxu0 %v1202_v56  ;;  %794 = vmatprep.subr.bf16.mxu1 %v1375_v0 }
  0x86   :  { %656 = vmatpush1.bf16.msra.mxu0 %v1204_v57  ;;  %795 = vmatpush1.bf16.msra.mxu1 %v1205_v58 }
  0x87   :  { %657 = vmatprep.subr.bf16.mxu0 %v1208_v59  ;;  %796 = vmatprep.subr.bf16.mxu1 %v1375_v0 }
  0x8a   :  { %658 = vmatpush1.bf16.msra.mxu0 %v1211_v60  ;;  %797 = vmatpush1.bf16.msra.mxu1 %v1212_v61 }
  0x8b   :  { %680 = vmatprep.subr.bf16.mxu0 %v1215_v62  ;;  %798 = vmatprep.subr.bf16.mxu1 %v1375_v0  ;;  %v1223_v0 = vld [vmem:[#allocation5 + $0x1b0] ss:$12 sps:$4 sm:$0xff]  }
  0x8d   :  { %660 = vmatmul.mubr.bf16.vlgmr.msra.gmra.mrb[0].mxu0 %v1455_v35 }
  0x8e   :  { %681 = vmatpush1.bf16.msra.mxu0 %v1213_v1  ;;  %669 = vmatprep.mubr.bf16.mxu0 %v1206_v48 }
  0x8f   :  { %799 = vmatpush1.bf16.msra.mxu1 %v1216_v3  ;;  %682 = vmatprep.subr.bf16.mxu0 %v1222_v4 }
  0x92   :  { %815 = vmatmul.mubr.bf16.vlgmr.msra.gmra.mrb[8].mxu1 %v1217_v7  ;;  %683 = vmatpush1.bf16.msra.mxu0 %v1220_v8 }
  0x93   :  { %684 = vmatprep.subr.bf16.mxu0 %v1225_v9  ;;  %1068 = vmatprep.mubr.msk.bf16.mxu1 %vm620_vm0, %v1238_v10 }
  0x95   :  { %670 = vmatmul.mubr.bf16.gmra.mrb[4].mxu0 %v1462_v49 }
  0x96   :  { %685 = vmatpush1.bf16.msra.mxu0 %v1223_v0  ;;  %1065 = vmatprep.mubr.msk.bf16.mxu0 %vm620_vm0, %v1466_v53 }
  0x97   :  { %686 = vmatprep.subr.bf16.mxu0 %v1228_v13 }
  0x9a   :  { %687 = vmatpush1.bf16.msra.mxu0 %v1226_v16  ;;  %823 = vmatmul.mubr.bf16.gmra.mrb[12].mxu1 %v1240_v17 }
  0x9b   :  { %688 = vmatprep.subr.bf16.mxu0 %v1231_v18 }
  0x9e   :  { %689 = vmatpush1.bf16.msra.mxu0 %v1229_v19 }
  0x9f   :  { %690 = vmatprep.subr.bf16.mxu0 %v1234_v20 }
  0xa2   :  { %691 = vmatpush1.bf16.msra.mxu0 %v1232_v21 }
  0xa3   :  { %692 = vmatprep.subr.bf16.mxu0 %v1237_v22 }
  0xa6   :  { %693 = vmatpush1.bf16.msra.mxu0 %v1235_v23 }
  0xa7   :  { %694 = vmatprep.subr.bf16.mxu0 %v1243_v24 }
  0xaa   :  { %695 = vmatpush1.bf16.msra.mxu0 %v1241_v25 }
  0xab   :  { %696 = vmatprep.subr.bf16.mxu0 %v1246_v26 }
  0xae   :  { %697 = vmatpush1.bf16.msra.mxu0 %v1244_v27 }
  0xb1   :  { %713 = vmatmul.mubr.bf16.vlgmr.msra.gmra.mrb[0].mxu0 %v1217_v7 }
  0xb2   :  { %1066 = vmatprep.mubr.msk.bf16.mxu0 %vm620_vm0, %v1238_v10 }
  0xb9   :  { %723 = vmatmul.mubr.bf16.gmra.mrb[4].mxu0 %v1240_v17 }
  0xe0   :  { %v838_v40 = vpop.permute.xlu0 %837 }
  0xe3   :  { %v848_v41 = vpop.permute.xlu1 %847 }
  0xe4   :  { %v843_v42 = vpop.permute.xlu0 %842 }
  0xe7   :  { %v1480_v43 = vpop.permute.xlu1 %852 }
  0xe8   :  { %v874_v48 = vpop.permute.xlu0 %873 }
  0xeb   :  { %v879_v52 = vpop.permute.xlu1 %878 }
  0xec   :  { %v884_v63 = vpop.permute.xlu0 %883 }
  0xef   :  { %v889_v5 = vpop.permute.xlu1 %888 }
 0x140   :  { %v1101_v28 = vpop.f32.mrb[0].mxu1 }
 0x141   :  { %v1102_v29 = vpop.f32.mrb[1].mxu1 }
 0x142   :  { %v1103_v30 = vadd.f32 %v1102_v29, %v1101_v28  ;;  %v1104_v31 = vpop.f32.mrb[2].mxu1 }
 0x143   :  { %v1105_v32 = vpop.f32.mrb[3].mxu1 }
 0x144   :  { %v1106_v33 = vadd.f32 %v1105_v32, %v1104_v31 }
 0x148   :  { %v1107_v34 = vpop.f32.mrb[4].mxu1 }
 0x149   :  { %v1108_v35 = vpop.f32.mrb[5].mxu1 }
 0x14a   :  { %v1109_v36 = vadd.f32 %v1108_v35, %v1107_v34  ;;  %v1110_v37 = vpop.f32.mrb[6].mxu1 }
 0x14b   :  { %v1111_v38 = vpop.f32.mrb[7].mxu1 }
 0x14c   :  { %v1112_v39 = vadd.f32 %v1111_v38, %v1110_v37 }
 0x165   :  { %v816_v44 = vpop.f32.mrb[8].mxu1 }
 0x166   :  { %v817_v45 = vadd.f32 %v1103_v30, %v816_v44  ;;  %v818_v46 = vpop.f32.mrb[9].mxu1 }
 0x167   :  { %v819_v47 = vpop.f32.mrb[10].mxu1 }
 0x168   :  { %v857_v49 = vmul.f32 %v838_v40, %v817_v45  ;;  %v820_v50 = vadd.f32 %v1106_v33, %v819_v47  ;;  %v821_v51 = vpop.f32.mrb[11].mxu1 }
 0x16a   :  { %v860_v53 = vmul.f32 %v843_v42, %v820_v50  ;;  %v893_v54 = vadd.f32 %v874_v48, %v857_v49 }
 0x16c   :  { %v905_v55 = vmax.f32 %v893_v54, 0.0  ;;  %v896_v56 = vadd.f32 %v879_v52, %v860_v53 }
 0x16d   :  { %v824_v57 = vpop.f32.mrb[12].mxu1 }
 0x16e   :  { %v1078_v58 = vpack.c.bf16 %v905_v55, %v905_v55  ;;  %v908_v59 = vmax.f32 %v896_v56, 0.0  ;;  %v825_v60 = vadd.f32 %v1109_v36, %v824_v57  ;;  %v826_v61 = vpop.f32.mrb[13].mxu1 }
 0x16f   :  { %v827_v62 = vpop.f32.mrb[14].mxu1 }
 0x170   :  { %956 = vst [vmem:[#allocation10 + $0x8] sm:$0xf] %v1078_v58  ;;  %v1080_v1 = vpack.c.bf16 %v908_v59, %v908_v59  ;;  %v863_v2 = vmul.f32 %v848_v41, %v825_v60  ;;  %v828_v3 = vadd.f32 %v1112_v39, %v827_v62  ;;  %v829_v4 = vpop.f32.mrb[15].mxu1 }
 0x172   :  { %958 = vst [vmem:[#allocation10 + $0x14] sm:$0xf] %v1080_v1  ;;  %v866_v6 = vmul.f32 %v1480_v43, %v828_v3  ;;  %v899_v7 = vadd.f32 %v884_v63, %v863_v2 }
 0x174   :  { %v902_v8 = vadd.f32 %v889_v5, %v866_v6  ;;  %v911_v9 = vmax.f32 %v899_v7, 0.0 }
 0x176   :  { %v914_v10 = vmax.f32 %v902_v8, 0.0  ;;  %v1082_v11 = vpack.c.bf16 %v911_v9, %v911_v9 }
 0x178   :  { %v1084_v12 = vpack.c.bf16 %v914_v10, %v914_v10  ;;  %960 = vst [vmem:[#allocation10 + $0x20] sm:$0xf] %v1082_v11 }
 0x17a   :  { %962 = vst [vmem:[#allocation10 + $0x2c] sm:$0xf] %v1084_v12 }
 0x184   :  { %v714_v0 = vpop.f32.mrb[0].mxu0 }
 0x185   :  { %v855_v13 = vmul.f32 %v838_v40, %v714_v0  ;;  %v716_v14 = vpop.f32.mrb[1].mxu0 }
 0x186   :  { %v856_v15 = vmul.f32 %v838_v40, %v716_v14  ;;  %v718_v16 = vpop.f32.mrb[2].mxu0 }
 0x187   :  { %v891_v17 = vadd.f32 %v874_v48, %v855_v13  ;;  %v858_v18 = vmul.f32 %v843_v42, %v718_v16  ;;  %v720_v19 = vpop.f32.mrb[3].mxu0 }
 0x188   :  { %v892_v20 = vadd.f32 %v874_v48, %v856_v15  ;;  %v859_v21 = vmul.f32 %v843_v42, %v720_v19 }
 0x189   :  { %v903_v22 = vmax.f32 %v891_v17, 0.0  ;;  %v894_v23 = vadd.f32 %v879_v52, %v858_v18 }
 0x18a   :  { %v904_v24 = vmax.f32 %v892_v20, 0.0  ;;  %v895_v25 = vadd.f32 %v879_v52, %v859_v21 }
 0x18b   :  { %v906_v26 = vmax.f32 %v894_v23, 0.0 }
 0x18c   :  { %v1077_v27 = vpack.c.bf16 %v904_v24, %v903_v22  ;;  %v907_v28 = vmax.f32 %v895_v25, 0.0  ;;  %v724_v29 = vpop.f32.mrb[4].mxu0 }
 0x18d   :  { %v861_v30 = vmul.f32 %v848_v41, %v724_v29  ;;  %v726_v31 = vpop.f32.mrb[5].mxu0 }
 0x18e   :  { %955 = vst [vmem:[#allocation10] sm:$0xff] %v1077_v27  ;;  %v1079_v32 = vpack.c.bf16 %v907_v28, %v906_v26  ;;  %v862_v33 = vmul.f32 %v848_v41, %v726_v31  ;;  %v728_v34 = vpop.f32.mrb[6].mxu0 }
 0x18f   :  { %v897_v35 = vadd.f32 %v884_v63, %v861_v30  ;;  %v864_v36 = vmul.f32 %v1480_v43, %v728_v34  ;;  %v730_v37 = vpop.f32.mrb[7].mxu0 }
 0x190   :  { %957 = vst [vmem:[#allocation10 + $0xc] sm:$0xff] %v1079_v32  ;;  %v898_v38 = vadd.f32 %v884_v63, %v862_v33  ;;  %v865_v39 = vmul.f32 %v1480_v43, %v730_v37 }
 0x191   :  { %v909_v40 = vmax.f32 %v897_v35, 0.0  ;;  %v900_v42 = vadd.f32 %v889_v5, %v864_v36 }
 0x192   :  { %v910_v44 = vmax.f32 %v898_v38, 0.0  ;;  %v901_v45 = vadd.f32 %v889_v5, %v865_v39 }
 0x193   :  { %v912_v46 = vmax.f32 %v900_v42, 0.0 }
 0x194   :  { %v1081_v47 = vpack.c.bf16 %v910_v44, %v909_v40  ;;  %v913_v48 = vmax.f32 %v901_v45, 0.0 }
 0x196   :  { %959 = vst [vmem:[#allocation10 + $0x18] sm:$0xff] %v1081_v47  ;;  %v1083_v41 = vpack.c.bf16 %v913_v48, %v912_v46 }
 0x198   :  { %961 = vst [vmem:[#allocation10 + $0x24] sm:$0xff] %v1083_v41 }
 0x199   :  { %1346 = shalt.err (!%p1343_p8)
}
 0x19a   :  { %s1347_s19 = scalar_lea.hbm %s1504_s4, 768 }
 0x19b   :  { %p1348_p9 = scmp.ne.s32.totalorder %s1504_s4, %s1347_s19  ;;  %p1351_p10 = scmp.lt.u32.totalorder %s1347_s19, %s1504_s4 }
 0x19d   :  { %p1353_p11 = pnand %p1351_p10, %p1348_p9 }
 0x19f   :  { %1356 = shalt.err (!%p1353_p11)
}
 0x1a0   :  { %974 = dma.vmem_to_hbm [thread:$0]  %s969_s15, 768, %s1504_s4, [#allocation4], %s1366_s25, %s1366_s25, %s1367_s26  }
 0x1a1   :  { %1363 = dma.done.wait [#allocation4], 768  }
 0x1a2   :  { %1364 = vsyncadd [#allocation4], 4294966528 }
 0x1a3   :  { %978 = vsyncpa [#allocation3], 1 }
 0x1a4   :  { %979 = vsyncpa [#allocation6], 1 }
 0x1a5   :  { %980 = vsyncpa [#allocation9], 1 }
 0x1a6   :  { %981 = vsyncpa [#allocation4], 1 }

// kernel: net_forward.6
= control target key start
LH: loop header
LB: loop body
LE: loop exit
PB: predicated region body
PF: predicated region fallthrough
CT: control target
= control target key end

     0   :  { %9 = vsyncpa [#allocation3], 0  ;;  %s1350_s0 = inlined_call_operand.hbm [shape: bf16[32,800], index: 0, kind: input, shape index: {}]   ;;  %s1351_s1 = inlined_call_operand.hbm [shape: bf16[800,128], index: 1, kind: input, shape index: {}]   ;;  %s1352_s2 = inlined_call_operand.hbm [shape: f32[32,1], index: 2, kind: input, shape index: {}]   ;;  %s1353_s3 = inlined_call_operand.hbm [shape: f32[32,1], index: 3, kind: input, shape index: {}]   ;;  %s1354_s4 = inlined_call_operand.hbm [shape: bf16[32,128], index: 4, kind: output, shape index: {}]  }
   0x1   :  { %10 = vsyncpa [#allocation6], 0 }
   0x2   :  { %11 = vsyncpa [#allocation9], 0 }
   0x3   :  { %12 = vsyncpa [#allocation4], 0  ;;  %s1245_s15 = smov [#allocation5]   ;;  %s1127_s19 = scalar_lea.hbm %s1351_s1, 6400 }
   0x4   :  { %s30_s16 = sshll.u32 %s1245_s15, 4  ;;  %p1128_p0 = scmp.ne.s32.totalorder %s1351_s1, %s1127_s19  ;;  %s31_s16 = int_to_ptr.vmem [resolvable:$true] %s30_s16 }
   0x5   :  { %p1131_p1 = scmp.lt.u32.totalorder %s1127_s19, %s1351_s1 }
   0x7   :  { %p1133_p2 = pnand %p1131_p1, %p1128_p0 }
   0x9   :  { %1136 = shalt.err (!%p1133_p2)
}
   0xa   :  { %s1137_s24 = scalar_lea.vmem %s31_s16, 6400  ;;  %p1142_p4 = scmp.lt.s32.totalorder %s31_s16, %s31_s16 }
   0xb   :  { %p1138_p3 = scmp.ne.s32.totalorder %s31_s16, %s1137_s24  ;;  %p1143_p5 = scmp.lt.s32.totalorder %s1137_s24, %s1137_s24 }
   0xd   :  { %p1144_p6 = por %p1143_p5, %p1142_p4 }
   0xf   :  { %p1145_p7 = pnand %p1144_p6, %p1138_p3 }
  0x11   :  { %1148 = shalt.err (!%p1145_p7)
}
  0x12   :  { %s1246_s25 = smov 64   ;;  %s1247_s26 = smov 4  }
  0x13   :  { %36 = dma.hbm_to_vmem [thread:$0]  %s1351_s1, 6400, %s31_s16, [#allocation6], %s1246_s25, %s1246_s25, %s1247_s26  }
  0x14   :  { %s1248_s29 = smov [#allocation2]   ;;  %s1149_s7 = scalar_lea.hbm %s1350_s0, 1792 }
  0x15   :  { %s18_s30 = sshll.u32 %s1248_s29, 4  ;;  %p1150_p8 = scmp.ne.s32.totalorder %s1350_s0, %s1149_s7  ;;  %s19_s30 = int_to_ptr.vmem [resolvable:$true] %s18_s30 }
  0x16   :  { %p1153_p9 = scmp.lt.u32.totalorder %s1149_s7, %s1350_s0 }
  0x18   :  { %p1155_p10 = pnand %p1153_p9, %p1150_p8 }
  0x1a   :  { %1158 = shalt.err (!%p1155_p10)
}
  0x1b   :  { %s1159_s12 = scalar_lea.vmem %s19_s30, 1792  ;;  %p1164_p12 = scmp.lt.s32.totalorder %s19_s30, %s19_s30 }
  0x1c   :  { %p1160_p11 = scmp.ne.s32.totalorder %s19_s30, %s1159_s12  ;;  %p1165_p13 = scmp.lt.s32.totalorder %s1159_s12, %s1159_s12 }
  0x1e   :  { %p1166_p0 = por %p1165_p13, %p1164_p12 }
  0x20   :  { %p1167_p1 = pnand %p1166_p0, %p1160_p11 }
  0x22   :  { %1170 = shalt.err (!%p1167_p1)
}
  0x23   :  { %s1249_s1 = smov 448   ;;  %s1250_s13 = smov 28  }
  0x24   :  { %24 = dma.hbm_to_vmem [thread:$0]  %s1350_s0, 1792, %s19_s30, [#allocation3], %s1249_s1, %s1249_s1, %s1250_s13  }
  0x25   :  { %s1251_s16 = smov [#allocation7]   ;;  %s1171_s20 = scalar_lea.hbm %s1352_s2, 512 }
  0x26   :  { %s42_s17 = sshll.u32 %s1251_s16, 4  ;;  %p1172_p2 = scmp.ne.s32.totalorder %s1352_s2, %s1171_s20  ;;  %s43_s17 = int_to_ptr.vmem [resolvable:$true] %s42_s17 }
  0x27   :  { %p1175_p3 = scmp.lt.u32.totalorder %s1171_s20, %s1352_s2 }
  0x29   :  { %p1177_p4 = pnand %p1175_p3, %p1172_p2 }
  0x2b   :  { %1180 = shalt.err (!%p1177_p4)
}
  0x2c   :  { %s1181_s27 = scalar_lea.vmem %s43_s17, 512  ;;  %p1186_p6 = scmp.lt.s32.totalorder %s43_s17, %s43_s17 }
  0x2d   :  { %p1182_p5 = scmp.ne.s32.totalorder %s43_s17, %s1181_s27  ;;  %p1187_p7 = scmp.lt.s32.totalorder %s1181_s27, %s1181_s27 }
  0x2f   :  { %p1188_p8 = por %p1187_p7, %p1186_p6 }
  0x31   :  { %p1189_p9 = pnand %p1188_p8, %p1182_p5 }
  0x33   :  { %1192 = shalt.err (!%p1189_p9)
}
  0x34   :  { %s1252_s0 = smov 128   ;;  %s1253_s28 = smov 8  }
  0x35   :  { %48 = dma.hbm_to_vmem [thread:$0]  %s1352_s2, 512, %s43_s17, [#allocation6], %s1252_s0, %s1252_s0, %s1253_s28  }
  0x36   :  { %s1254_s5 = smov [#allocation8]   ;;  %s1193_s9 = scalar_lea.hbm %s1353_s3, 512 }
  0x37   :  { %s54_s6 = sshll.u32 %s1254_s5, 4  ;;  %p1194_p10 = scmp.ne.s32.totalorder %s1353_s3, %s1193_s9  ;;  %s55_s6 = int_to_ptr.vmem [resolvable:$true] %s54_s6 }
  0x38   :  { %p1197_p11 = scmp.lt.u32.totalorder %s1193_s9, %s1353_s3 }
  0x3a   :  { %p1199_p12 = pnand %p1197_p11, %p1194_p10 }
  0x3c   :  { %1202 = shalt.err (!%p1199_p12)
}
  0x3d   :  { %s1203_s13 = scalar_lea.vmem %s55_s6, 512  ;;  %p1208_p0 = scmp.lt.s32.totalorder %s55_s6, %s55_s6 }
  0x3e   :  { %p1204_p13 = scmp.ne.s32.totalorder %s55_s6, %s1203_s13  ;;  %p1209_p1 = scmp.lt.s32.totalorder %s1203_s13, %s1203_s13 }
  0x40   :  { %p1210_p2 = por %p1209_p1, %p1208_p0 }
  0x42   :  { %p1211_p3 = pnand %p1210_p2, %p1204_p13 }
  0x44   :  { %1214 = shalt.err (!%p1211_p3)
}
  0x45   :  { %60 = dma.hbm_to_vmem [thread:$0]  %s1353_s3, 512, %s55_s6, [#allocation9], %s1252_s0, %s1252_s0, %s1253_s28  }
  0x46   :  { %1237 = dma.done.wait [#allocation3], 1792  }
  0x47   :  { %1238 = vsyncadd [#allocation3], 4294965504 }
  0x48   :  { %1239 = dma.done.wait [#allocation6], 6912  }
  0x49   :  { %1240 = vsyncadd [#allocation6], 4294960384 }
  0x4a   :  { %1241 = dma.done.wait [#allocation9], 512  }
  0x4b   :  { %1242 = vsyncadd [#allocation9], 4294966784  ;;  %v1255_v0 = vmov 0   ;;  %v1057_v1 = vld [vmem:[#allocation5 + $0x40] sm:$0xff]   ;;  %v1061_v5 = vld [vmem:[#allocation5 + $0x48] sm:$0xff]   ;;  %vm560_vm0 = vcmask 261120  }
  0x4c   :  { %1056 = vset.pattern.permute.xlu1 %v1255_v0  ;;  %1055 = vset.pattern.permute.xlu0 %v1255_v0  ;;  %v1058_v2 = vld [vmem:[#allocation5 + $0xc0] sm:$0xff]   ;;  %v1062_v6 = vld [vmem:[#allocation5 + $0xc8] sm:$0xff]   ;;  %v1065_v9 = vld [vmem:[#allocation5 + $0x50] sm:$0xff]   ;;  %s1256_s3 = smov [#allocation10]  }
  0x4d   :  { %947 = vmatprep.subr.bf16.mxu0 %v1057_v1  ;;  %v1059_v3 = vld [vmem:[#allocation5] sm:$0xff]   ;;  %975 = vmatprep.subr.bf16.mxu1 %v1058_v2  ;;  %v1063_v7 = vld [vmem:[#allocation5 + $0x8] sm:$0xff]   ;;  %v1066_v10 = vld [vmem:[#allocation5 + $0xd0] sm:$0xff]   ;;  %s848_s15 = sshll.u32 %s1256_s3, 4  ;;  %s849_s15 = int_to_ptr.vmem [resolvable:$true] %s848_s15 }
  0x4e   :  { %v1060_v4 = vld [vmem:[#allocation5 + $0x80] sm:$0xff]   ;;  %948 = vmatpush3.bf16.msra.mxu0 %v1059_v3  ;;  %v1064_v8 = vld [vmem:[#allocation5 + $0x88] sm:$0xff]   ;;  %v1067_v11 = vld [vmem:[#allocation5 + $0x10] sm:$0xff]   ;;  %s1215_s16 = scalar_lea.vmem %s849_s15, 256  ;;  %p1220_p5 = scmp.lt.s32.totalorder %s849_s15, %s849_s15 }
  0x4f   :  { %976 = vmatpush3.bf16.msra.mxu1 %v1060_v4  ;;  %949 = vmatprep.subr.bf16.mxu0 %v1061_v5  ;;  %v1068_v12 = vld [vmem:[#allocation5 + $0x90] sm:$0xff]   ;;  %v1069_v13 = vld [vmem:[#allocation5 + $0x58] sm:$0xff]   ;;  %v1073_v17 = vld [vmem:[#allocation5 + $0x60] sm:$0xff]   ;;  %p1216_p4 = scmp.ne.s32.totalorder %s849_s15, %s1215_s16  ;;  %p1221_p6 = scmp.lt.s32.totalorder %s1215_s16, %s1215_s16 }
  0x50   :  { %977 = vmatprep.subr.bf16.mxu1 %v1062_v6  ;;  %v1070_v14 = vld [vmem:[#allocation5 + $0xd8] sm:$0xff]   ;;  %v1074_v18 = vld [vmem:[#allocation5 + $0xe0] sm:$0xff]   ;;  %v1077_v21 = vld [vmem:[#allocation5 + $0x68] sm:$0xff]  }
  0x51   :  { %v1071_v15 = vld [vmem:[#allocation5 + $0x18] sm:$0xff]   ;;  %v1075_v19 = vld [vmem:[#allocation5 + $0x20] sm:$0xff]   ;;  %v1078_v22 = vld [vmem:[#allocation5 + $0xe8] sm:$0xff]   ;;  %p1222_p7 = por %p1221_p6, %p1220_p5 }
  0x52   :  { %950 = vmatpush3.bf16.msra.mxu0 %v1063_v7  ;;  %v1072_v16 = vld [vmem:[#allocation5 + $0x98] sm:$0xff]   ;;  %v1076_v20 = vld [vmem:[#allocation5 + $0xa0] sm:$0xff]   ;;  %v1079_v23 = vld [vmem:[#allocation5 + $0x28] sm:$0xff]  }
  0x53   :  { %978 = vmatpush3.bf16.msra.mxu1 %v1064_v8  ;;  %951 = vmatprep.subr.bf16.mxu0 %v1065_v9  ;;  %v1080_v24 = vld [vmem:[#allocation5 + $0xa8] sm:$0xff]   ;;  %v1081_v25 = vld [vmem:[#allocation5 + $0x70] sm:$0xff]   ;;  %v1085_v29 = vld [vmem:[#allocation5 + $0x78] sm:$0xff]   ;;  %p1223_p8 = pnand %p1222_p7, %p1216_p4 }
  0x54   :  { %979 = vmatprep.subr.bf16.mxu1 %v1066_v10  ;;  %v1082_v26 = vld [vmem:[#allocation5 + $0xf0] sm:$0xff]   ;;  %v1086_v30 = vld [vmem:[#allocation5 + $0xf8] sm:$0xff]   ;;  %v1095_v37 = vld [vmem:[#allocation5 + $0x140] sm:$0xff]  }
  0x55   :  { %v1083_v27 = vld [vmem:[#allocation5 + $0x30] sm:$0xff]   ;;  %v1087_v31 = vld [vmem:[#allocation5 + $0x38] sm:$0xff]   ;;  %v1096_v38 = vld [vmem:[#allocation5 + $0x100] sm:$0xff]  }
  0x56   :  { %952 = vmatpush3.bf16.msra.mxu0 %v1067_v11  ;;  %v1084_v28 = vld [vmem:[#allocation5 + $0xb0] sm:$0xff]   ;;  %v1088_v32 = vld [vmem:[#allocation5 + $0xb8] sm:$0xff]   ;;  %v1097_v39 = vld [vmem:[#allocation5 + $0x148] sm:$0xff]  }
  0x57   :  { %980 = vmatpush3.bf16.msra.mxu1 %v1068_v12  ;;  %953 = vmatprep.subr.bf16.mxu0 %v1069_v13  ;;  %v1089_v33 = vld [vmem:[#allocation2] ss:$28 sps:$4 sm:$0xff]   ;;  %v1092_v35 = vld [vmem:[#allocation2 + $0x8] ss:$28 sps:$4 sm:$0xff]   ;;  %v1103_v47 = vld [vmem:[#allocation5 + $0x160] sm:$0xff]  }
  0x58   :  { %981 = vmatprep.subr.bf16.mxu1 %v1070_v14  ;;  %v1091_v34 = vld [vmem:[#allocation2 + $0x4] ss:$28 sps:$4 sm:$0xff]   ;;  %v1094_v36 = vld [vmem:[#allocation2 + $0xc] ss:$28 sps:$4 sm:$0xff]   ;;  %v1098_v40 = vld [vmem:[#allocation5 + $0x108] sm:$0xff]  }
  0x59   :  { %599 = vmatprep.mubr.bf16.mxu0 %v1091_v34  ;;  %648 = vmatprep.mubr.bf16.mxu1 %v1094_v36  ;;  %v1099_v41 = vld [vmem:[#allocation5 + $0x150] sm:$0xff]   ;;  %v1101_v43 = vld [vmem:[#allocation5 + $0x158] sm:$0xff]   ;;  %v1105_v45 = vld [vmem:[#allocation2 + $0x3c] ss:$28 sps:$4 sm:$0xff]  }
  0x5a   :  { %954 = vmatpush3.bf16.msra.mxu0 %v1071_v15  ;;  %v1100_v42 = vld [vmem:[#allocation5 + $0x110] sm:$0xff]   ;;  %v1102_v44 = vld [vmem:[#allocation5 + $0x118] sm:$0xff]   ;;  %v1110_v48 = vld [vmem:[#allocation2 + $0x38] ss:$28 sps:$4 sm:$0xff]  }
  0x5b   :  { %982 = vmatpush3.bf16.msra.mxu1 %v1072_v16  ;;  %955 = vmatprep.subr.bf16.mxu0 %v1073_v17  ;;  %v1107_v46 = vld [vmem:[#allocation2 + $0x44] ss:$28 sps:$4 sm:$0xff]   ;;  %v1104_v50 = vld [vmem:[#allocation5 + $0x120] sm:$0xff]   ;;  %v1109_v51 = vld [vmem:[#allocation5 + $0x168] sm:$0xff]  }
  0x5c   :  { %983 = vmatprep.subr.bf16.mxu1 %v1074_v18  ;;  %v1111_v49 = vld [vmem:[#allocation2 + $0x40] ss:$28 sps:$4 sm:$0xff]   ;;  %v1115_v52 = vld [vmem:[#allocation5 + $0x180] sm:$0xff]   ;;  %v1116_v60 = vld [vmem:[#allocation5 + $0x178] sm:$0xff]  }
  0x5d   :  { %v1112_v53 = vld [vmem:[#allocation5 + $0x128] sm:$0xff]   ;;  %v1113_v54 = vld [vmem:[#allocation5 + $0x170] sm:$0xff]   ;;  %v1120_v55 = vld [vmem:[#allocation2 + $0x14] ss:$28 sps:$4 sm:$0xff]  }
  0x5e   :  { %956 = vmatpush3.bf16.msra.mxu0 %v1075_v19  ;;  %v1114_v56 = vld [vmem:[#allocation5 + $0x130] sm:$0xff]   ;;  %v1121_v57 = vld [vmem:[#allocation5 + $0x188] sm:$0xff]   ;;  %v1123_v59 = vld [vmem:[#allocation2 + $0x50] ss:$28 sps:$4 sm:$0xff]  }
  0x5f   :  { %984 = vmatpush3.bf16.msra.mxu1 %v1076_v20  ;;  %957 = vmatprep.subr.bf16.mxu0 %v1077_v21  ;;  %v1122_v58 = vld [vmem:[#allocation2 + $0x18] ss:$28 sps:$4 sm:$0xff]   ;;  %v763_v62 = vld [vmem:[#allocation7] sm:$0xff]  ;;  %v1117_v63 = vld [vmem:[#allocation5 + $0x138] sm:$0xff]  }
  0x60   :  { %985 = vmatprep.subr.bf16.mxu1 %v1078_v22  ;;  %v765_v61 = vld [vmem:[#allocation7 + $0x10] sm:$0xff]  ;;  %769 = vperm.xlu0 %1055, %v763_v62   ;;  %v766_v0 = vld [vmem:[#allocation7 + $0x18] sm:$0xff]  ;;  %v764_v1 = vld [vmem:[#allocation7 + $0x8] sm:$0xff] }
  0x61   :  { %779 = vperm.xlu1 %1056, %v765_v61   ;;  %v1118_v2 = vld [vmem:[#allocation2 + $0x10] ss:$28 sps:$4 sm:$0xff]   ;;  %v791_v5 = vld [vmem:[#allocation8] sm:$0xff]  ;;  %v794_v6 = vld [vmem:[#allocation8 + $0x18] sm:$0xff] }
  0x62   :  { %958 = vmatpush3.bf16.msra.mxu0 %v1079_v23  ;;  %v1124_v3 = vld [vmem:[#allocation2 + $0x4c] ss:$28 sps:$4 sm:$0xff]   ;;  %v793_v7 = vld [vmem:[#allocation8 + $0x10] sm:$0xff] }
  0x63   :  { %986 = vmatpush3.bf16.msra.mxu1 %v1080_v24  ;;  %959 = vmatprep.subr.bf16.mxu0 %v1081_v25  ;;  %v792_v4 = vld [vmem:[#allocation8 + $0x8] sm:$0xff] }
  0x64   :  { %987 = vmatprep.subr.bf16.mxu1 %v1082_v26  ;;  %774 = vperm.xlu0 %1055, %v764_v1   ;;  %v1126_v8 = vld [vmem:[#allocation2 + $0x48] ss:$28 sps:$4 sm:$0xff]  }
  0x65   :  { %784 = vperm.xlu1 %1056, %v766_v0  }
  0x66   :  { %960 = vmatpush3.bf16.msra.mxu0 %v1083_v27 }
  0x67   :  { %988 = vmatpush3.bf16.msra.mxu1 %v1084_v28  ;;  %961 = vmatprep.subr.bf16.mxu0 %v1085_v29 }
  0x68   :  { %989 = vmatprep.subr.bf16.mxu1 %v1086_v30  ;;  %797 = vperm.xlu0 %1055, %v791_v5  }
  0x69   :  { %802 = vperm.xlu1 %1056, %v792_v4  }
  0x6a   :  { %962 = vmatpush3.bf16.msra.mxu0 %v1087_v31 }
  0x6b   :  { %990 = vmatpush3.bf16.msra.mxu1 %v1088_v32  ;;  %1003 = vmatprep.subr.bf16.mxu0 %v1095_v37 }
  0x6c   :  { %1035 = vmatprep.subr.bf16.mxu1 %v1115_v52  ;;  %807 = vperm.xlu0 %1055, %v793_v7  }
  0x6d   :  { %600 = vmatmul.mubr.bf16.vlgmr.msra.gmra.mrb[0].mxu0 %v1089_v33  ;;  %812 = vperm.xlu1 %1056, %v794_v6  }
  0x6e   :  { %649 = vmatmul.mubr.bf16.vlgmr.msra.gmra.mrb[0].mxu1 %v1092_v35  ;;  %1004 = vmatpush3.bf16.msra.mxu0 %v1096_v38 }
  0x6f   :  { %1005 = vmatprep.subr.bf16.mxu0 %v1097_v39  ;;  %607 = vmatprep.mubr.bf16.mxu0 %v1105_v45 }
  0x70   :  { %656 = vmatprep.mubr.bf16.mxu1 %v1107_v46  ;;  %1036 = vmatpush3.bf16.msra.mxu1 %v1115_v52 }
  0x71   :  { %1037 = vmatprep.subr.bf16.mxu1 %v1121_v57 }
  0x72   :  { %1006 = vmatpush3.bf16.msra.mxu0 %v1098_v40 }
  0x73   :  { %1007 = vmatprep.subr.bf16.mxu0 %v1099_v41 }
  0x74   :  { %1038 = vmatpush3.bf16.msra.mxu1 %v1121_v57 }
  0x75   :  { %608 = vmatmul.mubr.bf16.gmra.mrb[4].mxu0 %v1110_v48 }
  0x76   :  { %1008 = vmatpush3.bf16.msra.mxu0 %v1100_v42  ;;  %657 = vmatmul.mubr.bf16.gmra.mrb[4].mxu1 %v1111_v49 }
  0x77   :  { %1009 = vmatprep.subr.bf16.mxu0 %v1101_v43  ;;  %697 = vmatprep.mubr.bf16.mxu0 %v1120_v55 }
  0x78   :  { %1039 = vmatprep.mubr.msk.bf16.mxu1 %vm560_vm0, %v1122_v58 }
  0x7a   :  { %1010 = vmatpush3.bf16.msra.mxu0 %v1102_v44 }
  0x7b   :  { %1011 = vmatprep.subr.bf16.mxu0 %v1103_v47 }
  0x7e   :  { %1012 = vmatpush3.bf16.msra.mxu0 %v1104_v50  ;;  %1040 = vmatmul.mubr.msk.bf16.vlgmr.msra.gmra.mrb[8].mxu1 %vm560_vm0, %v1123_v59 }
  0x7f   :  { %1013 = vmatprep.subr.bf16.mxu0 %v1109_v51 }
  0x82   :  { %1014 = vmatpush3.bf16.msra.mxu0 %v1112_v53 }
  0x83   :  { %1015 = vmatprep.subr.bf16.mxu0 %v1113_v54 }
  0x86   :  { %1016 = vmatpush3.bf16.msra.mxu0 %v1114_v56 }
  0x87   :  { %1017 = vmatprep.subr.bf16.mxu0 %v1116_v60 }
  0x8a   :  { %1018 = vmatpush3.bf16.msra.mxu0 %v1117_v63 }
  0x8d   :  { %698 = vmatmul.mubr.bf16.vlgmr.msra.gmra.mrb[8].mxu0 %v1118_v2 }
  0x8e   :  { %705 = vmatprep.mubr.bf16.mxu0 %v1124_v3 }
  0x95   :  { %706 = vmatmul.mubr.bf16.gmra.mrb[12].mxu0 %v1126_v8 }
  0xdf   :  { %v770_v41 = vpop.permute.xlu0 %769 }
  0xe0   :  { %v780_v42 = vpop.permute.xlu1 %779 }
  0xe3   :  { %v775_v47 = vpop.permute.xlu0 %774 }
  0xe4   :  { %v785_v51 = vpop.permute.xlu1 %784 }
  0xe7   :  { %v798_v57 = vpop.permute.xlu0 %797 }
  0xe8   :  { %v803_v63 = vpop.permute.xlu1 %802 }
 0x140   :  { %v963_v9 = vpop.f32.mrb[0].mxu0 }
 0x141   :  { %v991_v10 = vpop.f32.mrb[0].mxu1  ;;  %v964_v11 = vpop.f32.mrb[1].mxu0 }
 0x142   :  { %v965_v12 = vadd.f32 %v964_v11, %v963_v9  ;;  %v992_v13 = vpop.f32.mrb[1].mxu1  ;;  %v966_v14 = vpop.f32.mrb[2].mxu0 }
 0x143   :  { %v993_v15 = vadd.f32 %v992_v13, %v991_v10  ;;  %v994_v16 = vpop.f32.mrb[2].mxu1  ;;  %v967_v17 = vpop.f32.mrb[3].mxu0 }
 0x144   :  { %v968_v18 = vadd.f32 %v967_v17, %v966_v14  ;;  %v995_v19 = vpop.f32.mrb[3].mxu1  ;;  %v808_v11 = vpop.permute.xlu0 %807 }
 0x145   :  { %v651_v20 = vadd.f32 %v993_v15, %v965_v12  ;;  %v996_v21 = vadd.f32 %v995_v19, %v994_v16  ;;  %v813_v14 = vpop.permute.xlu1 %812 }
 0x147   :  { %v654_v22 = vadd.f32 %v996_v21, %v968_v18 }
 0x148   :  { %v969_v23 = vpop.f32.mrb[4].mxu0 }
 0x149   :  { %v997_v24 = vpop.f32.mrb[4].mxu1  ;;  %v970_v25 = vpop.f32.mrb[5].mxu0 }
 0x14a   :  { %v971_v26 = vadd.f32 %v970_v25, %v969_v23  ;;  %v998_v27 = vpop.f32.mrb[5].mxu1  ;;  %v972_v28 = vpop.f32.mrb[6].mxu0 }
 0x14b   :  { %v999_v29 = vadd.f32 %v998_v27, %v997_v24  ;;  %v1000_v30 = vpop.f32.mrb[6].mxu1  ;;  %v973_v31 = vpop.f32.mrb[7].mxu0 }
 0x14c   :  { %v974_v32 = vadd.f32 %v973_v31, %v972_v28  ;;  %v1001_v33 = vpop.f32.mrb[7].mxu1 }
 0x14d   :  { %v659_v34 = vadd.f32 %v999_v29, %v971_v26  ;;  %v1002_v35 = vadd.f32 %v1001_v33, %v1000_v30 }
 0x14f   :  { %v662_v36 = vadd.f32 %v1002_v35, %v974_v32 }
 0x151   :  { %v1041_v37 = vpop.f32.mrb[8].mxu1 }
 0x152   :  { %v748_v38 = vpop.f32.mrb[9].mxu1 }
 0x153   :  { %v1042_v39 = vpop.f32.mrb[10].mxu1 }
 0x154   :  { %v751_v40 = vpop.f32.mrb[11].mxu1 }
 0x160   :  { %v1019_v43 = vpop.f32.mrb[8].mxu0 }
 0x161   :  { %v1020_v44 = vpop.f32.mrb[9].mxu0 }
 0x162   :  { %v1021_v45 = vadd.f32 %v1020_v44, %v1019_v43  ;;  %v1022_v46 = vpop.f32.mrb[10].mxu0 }
 0x163   :  { %v1023_v48 = vpop.f32.mrb[11].mxu0 }
 0x164   :  { %v1024_v49 = vadd.f32 %v1023_v48, %v1022_v46  ;;  %v700_v50 = vadd.f32 %v1021_v45, %v651_v20 }
 0x166   :  { %v749_v52 = vadd.f32 %v748_v38, %v700_v50  ;;  %v703_v53 = vadd.f32 %v1024_v49, %v654_v22 }
 0x168   :  { %v787_v54 = vmul.f32 %v770_v41, %v749_v52  ;;  %v752_v55 = vadd.f32 %v751_v40, %v703_v53  ;;  %v1025_v56 = vpop.f32.mrb[12].mxu0 }
 0x169   :  { %v1026_v58 = vpop.f32.mrb[13].mxu0 }
 0x16a   :  { %v815_v59 = vadd.f32 %v798_v57, %v787_v54  ;;  %v788_v60 = vmul.f32 %v775_v47, %v752_v55  ;;  %v1027_v61 = vadd.f32 %v1026_v58, %v1025_v56  ;;  %v1028_v62 = vpop.f32.mrb[14].mxu0 }
 0x16b   :  { %v1029_v0 = vpop.f32.mrb[15].mxu0 }
 0x16c   :  { %v816_v1 = vadd.f32 %v803_v63, %v788_v60  ;;  %v708_v2 = vadd.f32 %v1027_v61, %v659_v34  ;;  %v1030_v3 = vadd.f32 %v1029_v0, %v1028_v62  ;;  %v819_v4 = vmax.f32 %v815_v59, 0.0 }
 0x16e   :  { %v820_v5 = vmax.f32 %v816_v1, 0.0  ;;  %v757_v6 = vadd.f32 %v1041_v37, %v708_v2  ;;  %v711_v7 = vadd.f32 %v1030_v3, %v662_v36 }
 0x170   :  { %v789_v8 = vmul.f32 %v780_v42, %v757_v6  ;;  %v760_v9 = vadd.f32 %v1042_v39, %v711_v7  ;;  %v939_v10 = vpack.c.bf16 %v820_v5, %v819_v4 }
 0x172   :  { %v790_v12 = vmul.f32 %v785_v51, %v760_v9  ;;  %v817_v13 = vadd.f32 %v808_v11, %v789_v8  ;;  %940 = vst [vmem:[#allocation10] sm:$0xff] %v939_v10  }
 0x174   :  { %v818_v15 = vadd.f32 %v813_v14, %v790_v12  ;;  %v821_v16 = vmax.f32 %v817_v13, 0.0 }
 0x176   :  { %v822_v17 = vmax.f32 %v818_v15, 0.0 }
 0x178   :  { %v944_v18 = vpack.c.bf16 %v822_v17, %v821_v16 }
 0x17a   :  { %946 = vst [vmem:[#allocation10 + $0x8] sm:$0xff] %v944_v18  }
 0x17b   :  { %1226 = shalt.err (!%p1223_p8)
}
 0x17c   :  { %s1227_s19 = scalar_lea.hbm %s1354_s4, 256 }
 0x17d   :  { %p1228_p9 = scmp.ne.s32.totalorder %s1354_s4, %s1227_s19  ;;  %p1231_p10 = scmp.lt.u32.totalorder %s1227_s19, %s1354_s4 }
 0x17f   :  { %p1233_p11 = pnand %p1231_p10, %p1228_p9 }
 0x181   :  { %1236 = shalt.err (!%p1233_p11)
}
 0x182   :  { %854 = dma.vmem_to_hbm [thread:$0]  %s849_s15, 256, %s1354_s4, [#allocation4], %s1246_s25, %s1246_s25, %s1247_s26  }
 0x183   :  { %1243 = dma.done.wait [#allocation4], 256  }
 0x184   :  { %1244 = vsyncadd [#allocation4], 4294967040 }
 0x185   :  { %858 = vsyncpa [#allocation3], 1 }
 0x186   :  { %859 = vsyncpa [#allocation6], 1 }
 0x187   :  { %860 = vsyncpa [#allocation9], 1 }
 0x188   :  { %861 = vsyncpa [#allocation4], 1 }

// kernel: net_forward.7
= control target key start
LH: loop header
LB: loop body
LE: loop exit
PB: predicated region body
PF: predicated region fallthrough
CT: control target
= control target key end

     0   :  { %10 = vsyncpa [#allocation3], 0  ;;  %s1276_s0 = inlined_call_operand.hbm [shape: bf16[2,800], index: 0, kind: input, shape index: {}]   ;;  %s1277_s1 = inlined_call_operand.hbm [shape: bf16[800,25], index: 1, kind: input, shape index: {}]   ;;  %s1278_s2 = inlined_call_operand.hbm [shape: f32[1,25], index: 2, kind: input, shape index: {}]   ;;  %s1279_s3 = inlined_call_operand.hbm [shape: bf16[25,4], index: 3, kind: input, shape index: {}]   ;;  %s1280_s4 = inlined_call_operand.hbm [shape: f32[1,4], index: 4, kind: input, shape index: {}]   ;;  %s1281_s5 = inlined_call_operand.hbm [shape: f32[2,4], index: 5, kind: output, shape index: {}]  }
   0x1   :  { %11 = vsyncpa [#allocation6], 0 }
   0x2   :  { %12 = vsyncpa [#allocation9], 0 }
   0x3   :  { %13 = vsyncpa [#allocation4], 0  ;;  %s1154_s18 = smov [#allocation5]   ;;  %s1014_s22 = scalar_lea.hbm %s1277_s1, 6400 }
   0x4   :  { %s29_s19 = sshll.u32 %s1154_s18, 4  ;;  %p1015_p0 = scmp.ne.s32.totalorder %s1277_s1, %s1014_s22  ;;  %s30_s19 = int_to_ptr.vmem [resolvable:$true] %s29_s19 }
   0x5   :  { %p1018_p1 = scmp.lt.u32.totalorder %s1014_s22, %s1277_s1 }
   0x7   :  { %p1020_p2 = pnand %p1018_p1, %p1015_p0 }
   0x9   :  { %1023 = shalt.err (!%p1020_p2)
}
   0xa   :  { %s1024_s27 = scalar_lea.vmem %s30_s19, 6400  ;;  %p1029_p4 = scmp.lt.s32.totalorder %s30_s19, %s30_s19 }
   0xb   :  { %p1025_p3 = scmp.ne.s32.totalorder %s30_s19, %s1024_s27  ;;  %p1030_p5 = scmp.lt.s32.totalorder %s1024_s27, %s1024_s27 }
   0xd   :  { %p1031_p6 = por %p1030_p5, %p1029_p4 }
   0xf   :  { %p1032_p7 = pnand %p1031_p6, %p1025_p3 }
  0x11   :  { %1035 = shalt.err (!%p1032_p7)
}
  0x12   :  { %s1155_s28 = smov 64   ;;  %s1156_s29 = smov 4  }
  0x13   :  { %35 = dma.hbm_to_vmem [thread:$0]  %s1277_s1, 6400, %s30_s19, [#allocation6], %s1155_s28, %s1155_s28, %s1156_s29  }
  0x14   :  { %s1157_s7 = smov [#allocation8]   ;;  %s1158_s9 = smov [#allocation2]  }
  0x15   :  { %s51_s8 = sshll.u32 %s1157_s7, 4  ;;  %s20_s10 = sshll.u32 %s1158_s9, 4  ;;  %s52_s8 = int_to_ptr.vmem [resolvable:$true] %s51_s8  ;;  %s21_s10 = int_to_ptr.vmem [resolvable:$true] %s20_s10 }
  0x16   :  { %s1036_s13 = scalar_lea.hbm %s1279_s3, 256 }
  0x17   :  { %p1037_p8 = scmp.ne.s32.totalorder %s1279_s3, %s1036_s13  ;;  %p1040_p9 = scmp.lt.u32.totalorder %s1036_s13, %s1279_s3 }
  0x19   :  { %p1042_p10 = pnand %p1040_p9, %p1037_p8 }
  0x1b   :  { %1045 = shalt.err (!%p1042_p10)
}
  0x1c   :  { %s1046_s1 = scalar_lea.vmem %s52_s8, 256  ;;  %p1051_p12 = scmp.lt.s32.totalorder %s52_s8, %s52_s8 }
  0x1d   :  { %p1047_p11 = scmp.ne.s32.totalorder %s52_s8, %s1046_s1  ;;  %p1052_p13 = scmp.lt.s32.totalorder %s1046_s1, %s1046_s1 }
  0x1f   :  { %p1053_p0 = por %p1052_p13, %p1051_p12 }
  0x21   :  { %p1054_p1 = pnand %p1053_p0, %p1047_p11 }
  0x23   :  { %1057 = shalt.err (!%p1054_p1)
}
  0x24   :  { %57 = dma.hbm_to_vmem [thread:$0]  %s1279_s3, 256, %s52_s8, [#allocation9], %s1155_s28, %s1155_s28, %s1156_s29  }
  0x25   :  { %s1058_s22 = scalar_lea.hbm %s1276_s0, 112 }
  0x26   :  { %p1059_p2 = scmp.ne.s32.totalorder %s1276_s0, %s1058_s22  ;;  %p1062_p3 = scmp.lt.u32.totalorder %s1058_s22, %s1276_s0 }
  0x28   :  { %p1064_p4 = pnand %p1062_p3, %p1059_p2 }
  0x2a   :  { %1067 = shalt.err (!%p1064_p4)
}
  0x2b   :  { %s1068_s27 = scalar_lea.vmem %s21_s10, 112  ;;  %s1072_s30 = scalar_lea.vmem %s21_s10, 128 }
  0x2c   :  { %p1069_p5 = scmp.ne.s32.totalorder %s21_s10, %s1068_s27  ;;  %p1073_p6 = scmp.lt.s32.totalorder %s21_s10, %s21_s10 }
  0x2d   :  { %p1074_p7 = scmp.lt.s32.totalorder %s1072_s30, %s1068_s27 }
  0x2f   :  { %p1075_p8 = por %p1074_p7, %p1073_p6 }
  0x31   :  { %p1076_p9 = pnand %p1075_p8, %p1069_p5 }
  0x33   :  { %1079 = shalt.err (!%p1076_p9)
}
  0x34   :  { %23 = dma.hbm_to_vmem [thread:$0]  %s1276_s0, 112, %s21_s10, [#allocation3]  }
  0x35   :  { %s1159_s29 = smov [#allocation7]   ;;  %s1160_s7 = smov [#allocation10]  }
  0x36   :  { %s42_s6 = sshll.u32 %s1159_s29, 4  ;;  %s64_s8 = sshll.u32 %s1160_s7, 4  ;;  %s43_s6 = int_to_ptr.vmem [resolvable:$true] %s42_s6  ;;  %s65_s8 = int_to_ptr.vmem [resolvable:$true] %s64_s8 }
  0x37   :  { %s1080_s12 = scalar_lea.hbm %s1278_s2, 16 }
  0x38   :  { %p1081_p10 = scmp.ne.s32.totalorder %s1278_s2, %s1080_s12  ;;  %p1084_p11 = scmp.lt.u32.totalorder %s1080_s12, %s1278_s2 }
  0x3a   :  { %p1086_p12 = pnand %p1084_p11, %p1081_p10 }
  0x3c   :  { %1089 = shalt.err (!%p1086_p12)
}
  0x3d   :  { %s1090_s0 = scalar_lea.vmem %s43_s6, 16  ;;  %s1094_s10 = scalar_lea.vmem %s43_s6, 32 }
  0x3e   :  { %p1091_p13 = scmp.ne.s32.totalorder %s43_s6, %s1090_s0  ;;  %p1095_p0 = scmp.lt.s32.totalorder %s43_s6, %s43_s6 }
  0x3f   :  { %p1096_p1 = scmp.lt.s32.totalorder %s1094_s10, %s1090_s0 }
  0x41   :  { %p1097_p2 = por %p1096_p1, %p1095_p0 }
  0x43   :  { %p1098_p3 = pnand %p1097_p2, %p1091_p13 }
  0x45   :  { %1101 = shalt.err (!%p1098_p3)
}
  0x46   :  { %45 = dma.hbm_to_vmem [thread:$0]  %s1278_s2, 16, %s43_s6, [#allocation6]  }
  0x47   :  { %s1102_s20 = scalar_lea.hbm %s1280_s4, 16 }
  0x48   :  { %p1103_p4 = scmp.ne.s32.totalorder %s1280_s4, %s1102_s20  ;;  %p1106_p5 = scmp.lt.u32.totalorder %s1102_s20, %s1280_s4 }
  0x4a   :  { %p1108_p6 = pnand %p1106_p5, %p1103_p4 }
  0x4c   :  { %1111 = shalt.err (!%p1108_p6)
}
  0x4d   :  { %s1112_s25 = scalar_lea.vmem %s65_s8, 16  ;;  %s1116_s26 = scalar_lea.vmem %s65_s8, 32 }
  0x4e   :  { %p1113_p7 = scmp.ne.s32.totalorder %s65_s8, %s1112_s25  ;;  %p1117_p8 = scmp.lt.s32.totalorder %s65_s8, %s65_s8 }
  0x4f   :  { %p1118_p9 = scmp.lt.s32.totalorder %s1116_s26, %s1112_s25 }
  0x51   :  { %p1119_p10 = por %p1118_p9, %p1117_p8 }
  0x53   :  { %p1120_p11 = pnand %p1119_p10, %p1113_p7 }
  0x55   :  { %1123 = shalt.err (!%p1120_p11)
}
  0x56   :  { %67 = dma.hbm_to_vmem [thread:$0]  %s1280_s4, 16, %s65_s8, [#allocation9]  }
  0x57   :  { %1146 = dma.done.wait [#allocation3], 112  }
  0x58   :  { %1147 = vsyncadd [#allocation3], 4294967184 }
  0x59   :  { %1148 = dma.done.wait [#allocation6], 6416  }
  0x5a   :  { %1149 = vsyncadd [#allocation6], 4294960880 }
  0x5b   :  { %1150 = dma.done.wait [#allocation9], 272  }
  0x5c   :  { %1151 = vsyncadd [#allocation9], 4294967024  ;;  %v961_v0 = vld [vmem:[#allocation5 + $0x40] sm:$0xff]   ;;  %v965_v4 = vld [vmem:[#allocation5 + $0x48] sm:$0xff]   ;;  %v1161_v21 = vmov 1966171168   ;;  %v197_v23 = vlaneseq }
  0x5d   :  { %v962_v1 = vld [vmem:[#allocation5] sm:$0xff]   ;;  %861 = vmatprep.subr.bf16.mxu0 %v961_v0  ;;  %v966_v5 = vld [vmem:[#allocation5 + $0x8] sm:$0xff]   ;;  %v969_v8 = vld [vmem:[#allocation5 + $0x50] sm:$0xff]   ;;  %v195_v22 = vunpack.c.l.s4 %v1161_v21  ;;  %v1162_v45 = vmov 0.0   ;;  %vm1163_vm0 = vmmov 0   ;;  %vm547_vm1 = vcmask 261120  }
  0x5e   :  { %v963_v2 = vld [vmem:[#allocation5 + $0xc0] sm:$0xff]   ;;  %862 = vmatpush3.bf16.msra.mxu0 %v962_v1  ;;  %v967_v6 = vld [vmem:[#allocation5 + $0xc8] sm:$0xff]   ;;  %v970_v9 = vld [vmem:[#allocation5 + $0x10] sm:$0xff]   ;;  %v198_v29 = vshrl.u32 %v197_v23, 7  ;;  %vm739_vm2 = vcmask 1043456   ;;  %vm740_vm3 = vcmask 1044480  }
  0x5f   :  { %v964_v3 = vld [vmem:[#allocation5 + $0x80] sm:$0xff]   ;;  %883 = vmatprep.subr.bf16.mxu1 %v963_v2  ;;  %863 = vmatprep.subr.bf16.mxu0 %v965_v4  ;;  %v968_v7 = vld [vmem:[#allocation5 + $0x88] sm:$0xff]   ;;  %v971_v10 = vld [vmem:[#allocation5 + $0xd0] sm:$0xff]   ;;  %v196_v28 = vunpack.c.0.s8 %v195_v22  ;;  %vm735_vm4 = vcmask 203776   ;;  %s1165_s4 = smov [#allocation11]   ;;  %vm786_vm5 = vcmask 25600  }
  0x60   :  { %884 = vmatpush3.bf16.msra.mxu1 %v964_v3  ;;  %v972_v11 = vld [vmem:[#allocation5 + $0x90] sm:$0xff]   ;;  %v973_v12 = vld [vmem:[#allocation5 + $0x58] sm:$0xff]   ;;  %v977_v16 = vld [vmem:[#allocation5 + $0x60] sm:$0xff]   ;;  %s794_s30 = sshll.u32 %s1165_s4, 4  ;;  %s795_s30 = int_to_ptr.vmem [resolvable:$true] %s794_s30 }
  0x61   :  { %885 = vmatprep.subr.bf16.mxu1 %v967_v6  ;;  %v974_v13 = vld [vmem:[#allocation5 + $0x18] sm:$0xff]   ;;  %v978_v17 = vld [vmem:[#allocation5 + $0x20] sm:$0xff]   ;;  %v981_v20 = vld [vmem:[#allocation5 + $0x68] sm:$0xff]   ;;  %v199_v34 = vsub.s32 %v196_v28, %v198_v29  ;;  %s1124_s3 = scalar_lea.vmem %s795_s30, 32  ;;  %p1129_p13 = scmp.lt.s32.totalorder %s795_s30, %s795_s30 }
  0x62   :  { %864 = vmatpush3.bf16.msra.mxu0 %v966_v5  ;;  %v975_v14 = vld [vmem:[#allocation5 + $0xd8] sm:$0xff]   ;;  %v979_v18 = vld [vmem:[#allocation5 + $0xe0] sm:$0xff]   ;;  %v982_v24 = vld [vmem:[#allocation5 + $0x28] sm:$0xff]   ;;  %p1125_p12 = scmp.ne.s32.totalorder %s795_s30, %s1124_s3  ;;  %p1130_p0 = scmp.lt.s32.totalorder %s1124_s3, %s1124_s3 }
  0x63   :  { %865 = vmatprep.subr.bf16.mxu0 %v969_v8  ;;  %v976_v15 = vld [vmem:[#allocation5 + $0x98] sm:$0xff]   ;;  %v980_v19 = vld [vmem:[#allocation5 + $0xa0] sm:$0xff]   ;;  %v983_v25 = vld [vmem:[#allocation5 + $0xe8] sm:$0xff]   ;;  %v1164_v8 = vmov 65535  }
  0x64   :  { %886 = vmatpush3.bf16.msra.mxu1 %v968_v7  ;;  %v984_v26 = vld [vmem:[#allocation5 + $0xa8] sm:$0xff]   ;;  %v985_v27 = vld [vmem:[#allocation5 + $0x70] sm:$0xff]   ;;  %v989_v33 = vld [vmem:[#allocation5 + $0x78] sm:$0xff]   ;;  %p1131_p1 = por %p1130_p0, %p1129_p13 }
  0x65   :  { %887 = vmatprep.subr.bf16.mxu1 %v971_v10  ;;  %v986_v30 = vld [vmem:[#allocation5 + $0x30] sm:$0xff]   ;;  %v990_v35 = vld [vmem:[#allocation5 + $0x38] sm:$0xff]   ;;  %v994_v41 = vld [vmem:[#allocation5 + $0x140] sm:$0xff]  }
  0x66   :  { %866 = vmatpush3.bf16.msra.mxu0 %v970_v9  ;;  %v987_v31 = vld [vmem:[#allocation5 + $0xf0] sm:$0xff]   ;;  %v991_v36 = vld [vmem:[#allocation5 + $0xf8] sm:$0xff]   ;;  %v995_v47 = vld [vmem:[#allocation5 + $0x100] sm:$0xff]   ;;  %v741_v9 = vsel %vm739_vm2, 4294967295, %v1164_v8  ;;  %p1132_p2 = pnand %p1131_p1, %p1125_p12 }
  0x67   :  { %867 = vmatprep.subr.bf16.mxu0 %v973_v12  ;;  %v988_v32 = vld [vmem:[#allocation5 + $0xb0] sm:$0xff]   ;;  %v84_v37 = vld [vmem:[#allocation2] sm:$0x7f]  ;;  %v996_v50 = vld [vmem:[#allocation5 + $0x148] sm:$0xff]   ;;  %v742_v10 = vsel %vm740_vm3, %v741_v9, 0 }
  0x68   :  { %888 = vmatpush3.bf16.msra.mxu1 %v972_v11  ;;  %v193_v38 = vcombine.high %v84_v37, %v84_v37  ;;  %v200_v39 = vrot.slane %v84_v37, %v199_v34  ;;  %v993_v40 = vld [vmem:[#allocation5 + $0xb8] sm:$0xff]   ;;  %v997_v53 = vld [vmem:[#allocation5 + $0x108] sm:$0xff]   ;;  %v998_v54 = vld [vmem:[#allocation5 + $0x150] sm:$0xff]  }
  0x69   :  { %889 = vmatprep.subr.bf16.mxu1 %v975_v14  ;;  %v999_v55 = vld [vmem:[#allocation5 + $0x110] sm:$0xff]   ;;  %v1000_v56 = vld [vmem:[#allocation5 + $0x158] sm:$0xff]   ;;  %v1008_v57 = vld [vmem:[#allocation5 + $0x180] sm:$0xff]  }
  0x6a   :  { %868 = vmatpush3.bf16.msra.mxu0 %v974_v13  ;;  %v208_v42 = vcombine.high %v200_v39, %v200_v39  ;;  %v216_v43 = vrot.slane %v200_v39, %v199_v34  ;;  %v207_v44 = vrot.slane %v193_v38, %v199_v34  ;;  %v1001_v58 = vld [vmem:[#allocation5 + $0x118] sm:$0xff]   ;;  %v1002_v60 = vld [vmem:[#allocation5 + $0x160] sm:$0xff]   ;;  %v1011_v61 = vld [vmem:[#allocation5 + $0x188] sm:$0xff]  }
  0x6b   :  { %869 = vmatprep.subr.bf16.mxu0 %v977_v16  ;;  %v1003_v62 = vld [vmem:[#allocation5 + $0x120] sm:$0xff]   ;;  %v1004_v0 = vld [vmem:[#allocation5 + $0x168] sm:$0xff]   ;;  %v1006_v2 = vld [vmem:[#allocation5 + $0x170] sm:$0xff]  }
  0x6c   :  { %890 = vmatpush3.bf16.msra.mxu1 %v976_v15  ;;  %v230_v46 = vrot.slane %v208_v42, %v199_v34  ;;  %v209_v48 = vcombine.high %v207_v44, %v207_v44  ;;  %v238_v49 = vcombine.high %v216_v43, %v216_v43  ;;  %v223_v59 = vrot.slane %v207_v44, %v199_v34  ;;  %v1005_v1 = vld [vmem:[#allocation5 + $0x128] sm:$0xff]   ;;  %v1007_v3 = vld [vmem:[#allocation5 + $0x130] sm:$0xff]   ;;  %v1009_v4 = vld [vmem:[#allocation5 + $0x178] sm:$0xff]  }
  0x6d   :  { %891 = vmatprep.subr.bf16.mxu1 %v979_v18  ;;  %v1010_v5 = vld [vmem:[#allocation5 + $0x138] sm:$0xff]   ;;  %v805_v13 = vld [vmem:[#allocation7] ss:$0 sm:$0xff]  ;;  %v857_v38 = vld [vmem:[#allocation10] ss:$0 sm:$0xff] }
  0x6e   :  { %870 = vmatpush3.bf16.msra.mxu0 %v978_v17  ;;  %583 = vmatprep.mubr.bf16.mxu0 %v230_v46  ;;  %v240_v51 = vcombine.high %v230_v46, %v230_v46  ;;  %v237_v52 = vrot.slane %v209_v48, %v199_v34  ;;  %v239_v63 = vcombine.high %v223_v59, %v223_v59  ;;  %v1012_v6 = vld [vmem:[#allocation8] sm:$0xff]   ;;  %v1013_v7 = vld [vmem:[#allocation8 + $0x8] sm:$0x1f]  }
  0x6f   :  { %871 = vmatprep.subr.bf16.mxu0 %v981_v20  ;;  %v744_v11 = vand.u32 %v1013_v7, %v742_v10 }
  0x70   :  { %892 = vmatpush3.bf16.msra.mxu1 %v980_v19  ;;  %623 = vmatprep.mubr.bf16.mxu1 %v240_v51 }
  0x71   :  { %893 = vmatprep.subr.bf16.mxu1 %v983_v25 }
  0x72   :  { %872 = vmatpush3.bf16.msra.mxu0 %v982_v24 }
  0x73   :  { %873 = vmatprep.subr.bf16.mxu0 %v985_v27 }
  0x74   :  { %894 = vmatpush3.bf16.msra.mxu1 %v984_v26 }
  0x75   :  { %895 = vmatprep.subr.bf16.mxu1 %v987_v31 }
  0x76   :  { %874 = vmatpush3.bf16.msra.mxu0 %v986_v30 }
  0x77   :  { %875 = vmatprep.subr.bf16.mxu0 %v989_v33 }
  0x78   :  { %896 = vmatpush3.bf16.msra.mxu1 %v988_v32 }
  0x79   :  { %897 = vmatprep.subr.bf16.mxu1 %v991_v36 }
  0x7a   :  { %876 = vmatpush3.bf16.msra.mxu0 %v990_v35 }
  0x7b   :  { %905 = vmatprep.subr.bf16.mxu0 %v994_v41 }
  0x7c   :  { %898 = vmatpush3.bf16.msra.mxu1 %v993_v40 }
  0x7d   :  { %933 = vmatprep.subr.bf16.mxu1 %v1162_v45  ;;  %584 = vmatmul.mubr.bf16.vlgmr.msra.gmra.mrb[0].mxu0 %v216_v43 }
  0x7e   :  { %906 = vmatpush3.bf16.msra.mxu0 %v995_v47  ;;  %663 = vmatprep.mubr.bf16.mxu0 %v237_v52 }
  0x7f   :  { %624 = vmatmul.mubr.bf16.vlgmr.msra.gmra.mrb[0].mxu1 %v238_v49  ;;  %907 = vmatprep.subr.bf16.mxu0 %v996_v50 }
  0x80   :  { %937 = vmatprep.mubr.msk.bf16.mxu1 %vm1163_vm0, %v1162_v45  ;;  %934 = vmatpush3.bf16.msra.mxu1 %v1008_v57 }
  0x81   :  { %935 = vmatprep.subr.bf16.mxu1 %v1162_v45 }
  0x82   :  { %908 = vmatpush3.bf16.msra.mxu0 %v997_v53 }
  0x83   :  { %909 = vmatprep.subr.bf16.mxu0 %v998_v54 }
  0x84   :  { %936 = vmatpush3.bf16.msra.mxu1 %v1011_v61 }
  0x85   :  { %941 = vmatprep.subr.bf16.mxu1 %v1162_v45 }
  0x86   :  { %910 = vmatpush3.bf16.msra.mxu0 %v999_v55 }
  0x87   :  { %911 = vmatprep.subr.bf16.mxu0 %v1000_v56  ;;  %938 = vmatmul.mubr.msk.bf16.vlgmr.msra.gmra.mrb[4].mxu1 %vm547_vm1, %v239_v63 }
  0x88   :  { %945 = vmatprep.mubr.msk.bf16.mxu1 %vm1163_vm0, %v1162_v45  ;;  %942 = vmatpush3.bf16.msra.mxu1 %v1012_v6 }
  0x89   :  { %943 = vmatprep.subr.bf16.mxu1 %v1162_v45 }
  0x8a   :  { %912 = vmatpush3.bf16.msra.mxu0 %v1001_v58 }
  0x8b   :  { %913 = vmatprep.subr.bf16.mxu0 %v1002_v60 }
  0x8c   :  { %944 = vmatpush3.bf16.msra.mxu1 %v744_v11 }
  0x8e   :  { %914 = vmatpush3.bf16.msra.mxu0 %v1003_v62 }
  0x8f   :  { %915 = vmatprep.subr.bf16.mxu0 %v1004_v0 }
  0x92   :  { %916 = vmatpush3.bf16.msra.mxu0 %v1005_v1 }
  0x93   :  { %917 = vmatprep.subr.bf16.mxu0 %v1006_v2 }
  0x96   :  { %918 = vmatpush3.bf16.msra.mxu0 %v1007_v3 }
  0x97   :  { %919 = vmatprep.subr.bf16.mxu0 %v1009_v4 }
  0x9a   :  { %920 = vmatpush3.bf16.msra.mxu0 %v1010_v5 }
  0x9d   :  { %664 = vmatmul.mubr.bf16.vlgmr.msra.gmra.mrb[4].mxu0 %v223_v59 }
 0x150   :  { %v877_v12 = vpop.f32.mrb[0].mxu0 }
 0x151   :  { %v878_v14 = vpop.f32.mrb[1].mxu0 }
 0x152   :  { %v879_v15 = vadd.f32 %v878_v14, %v877_v12  ;;  %v880_v16 = vpop.f32.mrb[2].mxu0  ;;  %v899_v17 = vpop.f32.mrb[0].mxu1 }
 0x153   :  { %v881_v18 = vpop.f32.mrb[3].mxu0  ;;  %v900_v19 = vpop.f32.mrb[1].mxu1 }
 0x154   :  { %v586_v20 = vadd.f32 %v879_v15, %v805_v13  ;;  %v901_v21 = vadd.f32 %v900_v19, %v899_v17  ;;  %v902_v22 = vpop.f32.mrb[2].mxu1 }
 0x155   :  { %v903_v23 = vpop.f32.mrb[3].mxu1 }
 0x156   :  { %v626_v24 = vadd.f32 %v901_v21, %v586_v20 }
 0x15a   :  { %v705_v25 = vpop.f32.mrb[4].mxu1 }
 0x15b   :  { %v939_v26 = vpop.f32.mrb[5].mxu1 }
 0x15c   :  { %v708_v27 = vpop.f32.mrb[6].mxu1 }
 0x15d   :  { %v940_v28 = vpop.f32.mrb[7].mxu1 }
 0x170   :  { %v921_v29 = vpop.f32.mrb[4].mxu0 }
 0x171   :  { %v922_v30 = vpop.f32.mrb[5].mxu0 }
 0x172   :  { %v923_v31 = vadd.f32 %v922_v30, %v921_v29  ;;  %v924_v32 = vpop.f32.mrb[6].mxu0 }
 0x173   :  { %v925_v33 = vpop.f32.mrb[7].mxu0 }
 0x174   :  { %v666_v34 = vadd.f32 %v923_v31, %v626_v24 }
 0x176   :  { %v706_v35 = vadd.f32 %v705_v25, %v666_v34 }
 0x178   :  { %v711_v36 = vmax.f32 %v706_v35, 0.0 }
 0x17a   :  { %v712_v37 = vpack.c.bf16 %v711_v36, %v711_v36 }
 0x17c   :  { %946 = vmatmul.mubr.msk.bf16.vlgmr.msra.gmra.mrb[8].mxu1 %vm735_vm4, %v712_v37 }
 0x24f   :  { %v780_v39 = vpop.f32.mrb[8].mxu1 }
 0x250   :  { %v781_v40 = vadd.f32 %v857_v38, %v780_v39  ;;  %v947_v41 = vpop.f32.mrb[9].mxu1 }
 0x251   :  { %v783_v42 = vpop.f32.mrb[10].mxu1 }
 0x252   :  { %v948_v43 = vpop.f32.mrb[11].mxu1  ;;  %787 = vst.msk [vmem:[#allocation11] sm:$0x3] %vm786_vm5, %v781_v40 }
 0x253   :  { %1135 = shalt.err (!%p1132_p2)
}
 0x254   :  { %s1136_s6 = scalar_lea.hbm %s1281_s5, 32 }
 0x255   :  { %p1137_p3 = scmp.ne.s32.totalorder %s1281_s5, %s1136_s6  ;;  %p1140_p4 = scmp.lt.u32.totalorder %s1136_s6, %s1281_s5 }
 0x257   :  { %p1142_p5 = pnand %p1140_p4, %p1137_p3 }
 0x259   :  { %1145 = shalt.err (!%p1142_p5)
}
 0x25a   :  { %797 = dma.vmem_to_hbm [thread:$0]  %s795_s30, 32, %s1281_s5, [#allocation4]  }
 0x25b   :  { %1152 = dma.done.wait [#allocation4], 32  }
 0x25c   :  { %1153 = vsyncadd [#allocation4], 4294967264 }
 0x25d   :  { %801 = vsyncpa [#allocation3], 1 }
 0x25e   :  { %802 = vsyncpa [#allocation6], 1 }
 0x25f   :  { %803 = vsyncpa [#allocation9], 1 }
 0x260   :  { %804 = vsyncpa [#allocation4], 1 }

</bundles_post_ra>
